<compile_context>
chip_gen: v7x
topology: tpu7x:2x2x1
jax: 0.10.0
libtpu: 0.0.40
codegen_flags: <defaults>
</compile_context>

<pallas_src>
import functools
import math

import jax
import jax.numpy as jnp
from jax.experimental import pallas as pl
from jax.experimental.pallas import tpu as pltpu

LANE = 128                      # stored output-channel dim padded to a multiple of this
SUBLANE = 8
DEFAULT_ROW_TILE = 512          # output pixels (flattened rows) per grid step


def _round_up(x, m):
    return (x + m - 1) // m * m


def _cdiv(a, b):
    return -(-a // b)


@functools.lru_cache(maxsize=None)
def _vmem_limit_bytes():
    """Generation-aware scoped-VMEM limit (v5e/v6e ~110 MiB of 128; v7x ~54 MiB of 64)."""
    try:
        cap = int(pltpu.get_tpu_info().vmem_capacity_bytes)
    except Exception:
        cap = 64 * 1024 * 1024
    if cap < 32 * 1024 * 1024:
        cap = 64 * 1024 * 1024
    return min(int(cap * 0.85), 110 * 1024 * 1024)


# -----------------------------------------------------------------------------
# Pallas kernel: K-folded im2col slab + single GEMM + fused bias/gate/ELU epilogue
# -----------------------------------------------------------------------------
def _make_conv_kernel(tap_offsets, tile, ce, gated, cpad, activation):
    if activation not in ("elu", "none"):
        raise NotImplementedError(f"activation {activation!r}")

    def kernel(xb_ref, xh_ref, w_ref, b_ref, o_ref, slab_ref):
        # xb_ref:   (1, tile, ce)      body rows of this tile (auto-pipelined)
        # xh_ref:   (1, 1, halo, ce)   halo rows directly after this tile
        # w_ref:    (T*ce, NW)         K-folded fused weights (constant index -> resident)
        # b_ref:    (1, NW)            f32 bias
        # o_ref:    (1, tile, cpad)    lane-dense output tile
        # slab_ref: (tile, T*ce)       im2col slab scratch, fully overwritten each step
        for t, off in enumerate(tap_offsets):          # static, unrolled tap loop
            c0 = t * ce
            if off == 0:
                slab_ref[:, c0:c0 + ce] = xb_ref[0]
            elif off >= tile:
                slab_ref[:, c0:c0 + ce] = xh_ref[0, 0, off - tile:off, :]
            else:
                slab_ref[0:tile - off, c0:c0 + ce] = xb_ref[0, off:tile, :]
                slab_ref[tile - off:tile, c0:c0 + ce] = xh_ref[0, 0, 0:off, :]

        # Single MXU GEMM over K = taps * Cin: the whole tap reduction stays in the MXU.
        acc = jnp.dot(slab_ref[...], w_ref[...], preferred_element_type=jnp.float32)
        acc = acc + b_ref[...]                          # (1, NW) f32 broadcast
        if gated:
            feat = acc[:, :cpad]
            gate = acc[:, cpad:]
            if activation == "elu":
                # exp(x)-1 (min-guarded) instead of expm1: guaranteed Mosaic lowering.
                feat = jnp.where(feat > 0.0, feat,
                                 jnp.exp(jnp.minimum(feat, 0.0)) - 1.0)
            out = feat * jax.nn.sigmoid(gate)           # sigmoid/exp -> EUP slot
        else:
            out = acc                                   # norm/activation applied outside
        o_ref[0] = out.astype(o_ref.dtype)

    return kernel


def _conv_core(x_nhwc, w_hwio, bias, *, dilation, gated, cout, activation,
               compute_dtype, row_tile):
    """stride-1 'valid' conv of an already zero-padded NHWC input.

    The conv is evaluated at every *input* column; the (KW-1)*dilation right-most columns
    of each output row are garbage and must be sliced off by the caller.
    """
    n, hp, wp0, ce = x_nhwc.shape
    kh, kw, ce2, nw = w_hwio.shape
    assert ce == ce2

    # Pad width so row-tap offsets (ih * dilation * wp) are sublane (8) aligned.
    align = SUBLANE // math.gcd(dilation, SUBLANE)
    wp = _round_up(wp0, align)
    if wp != wp0:
        x_nhwc = jnp.pad(x_nhwc, ((0, 0), (0, 0), (0, wp - wp0), (0, 0)))

    oh = hp - dilation * (kh - 1)
    ow = wp - dilation * (kw - 1)
    assert oh > 0 and ow > 0
    cpad = nw // 2 if gated else nw
    T = kh * kw

    tap_offsets = tuple(ih * dilation * wp + iw * dilation
                        for ih in range(kh) for iw in range(kw))
    max_off = max(tap_offsets)
    rows_valid = oh * wp
    halo = max(SUBLANE, _round_up(max_off, SUBLANE))

    # Pick the largest row tile that keeps the per-step VMEM footprint inside budget.
    itemsize = jnp.dtype(compute_dtype).itemsize
    tile = min(row_tile, _round_up(rows_valid, SUBLANE))
    fixed = 2 * T * ce * nw * itemsize + 2 * halo * ce * itemsize
    budget = int(_vmem_limit_bytes() * 0.6)

    def _tile_bytes(t):
        return (t * T * ce * itemsize        # slab scratch
                + 2 * t * ce * itemsize      # body double-buffer
                + 2 * t * cpad * itemsize    # output double-buffer
                + t * nw * 4)                # f32 GEMM result
    while tile > 64 and fixed + _tile_bytes(tile) > budget:
        tile = _round_up(tile // 2, SUBLANE)

    G = _cdiv(rows_valid, tile)
    total_rows = G * tile + halo

    x_flat = x_nhwc.reshape(n, hp * wp, ce).astype(compute_dtype)
    x_flat = jnp.pad(x_flat, ((0, 0), (0, total_rows - hp * wp), (0, 0)))
    x_body = x_flat[:, :G * tile, :]
    # Halo rows of tile g = rows [(g+1)*tile, (g+1)*tile + halo) of the flat image.
    hidx = (jnp.arange(G)[:, None] + 1) * tile + jnp.arange(halo)[None, :]
    x_halo = jnp.take(x_flat, hidx, axis=1)                      # (n, G, halo, ce)
    w_flat = w_hwio.reshape(T * ce, nw).astype(compute_dtype)    # K order = tap-major
    b_2d = bias.reshape(1, nw).astype(jnp.float32)

    kernel = _make_conv_kernel(tap_offsets, tile, ce, gated, cpad, activation)
    out = pl.pallas_call(
        kernel,
        out_shape=jax.ShapeDtypeStruct((n, G * tile, cpad), compute_dtype),
        grid=(n, G),
        in_specs=[
            pl.BlockSpec((1, tile, ce), lambda i, g: (i, g, 0)),
            pl.BlockSpec((1, 1, halo, ce), lambda i, g: (i, g, 0, 0)),
            # fused weights / bias: constant block index -> VMEM resident across the grid
            # TODO(synk): request single-buffering for these constant-index operands.
            pl.BlockSpec((T * ce, nw), lambda i, g: (0, 0)),
            pl.BlockSpec((1, nw), lambda i, g: (0, 0)),
        ],
        out_specs=pl.BlockSpec((1, tile, cpad), lambda i, g: (i, g, 0)),
        scratch_shapes=[pltpu.VMEM((tile, T * ce), compute_dtype)],
        compiler_params=pltpu.CompilerParams(
            dimension_semantics=("parallel", "parallel"),
            vmem_limit_bytes=_vmem_limit_bytes(),
        ),
    )(x_body, x_halo, w_flat, b_2d)

    out = out[:, :rows_valid, :cout]
    out = out.reshape(n, oh, wp, cout)[:, :, :ow, :]
    return out


# -----------------------------------------------------------------------------
# Wrapper glue: stride / dilation / transposed-conv handling (plain JAX, cheap)
# -----------------------------------------------------------------------------
def _space_to_depth(x_pad, w_hwio, s):
    """Rewrite a stride-s conv as a stride-1 conv on an s x s space-to-depth input."""
    n, hp, wp, cin = x_pad.shape
    kh, kw, _, nw = w_hwio.shape
    hp2, wp2 = _round_up(hp, s), _round_up(wp, s)
    x2 = jnp.pad(x_pad, ((0, 0), (0, hp2 - hp), (0, wp2 - wp), (0, 0)))
    xs = x2.reshape(n, hp2 // s, s, wp2 // s, s, cin)
    xs = xs.transpose(0, 1, 3, 2, 4, 5).reshape(n, hp2 // s, wp2 // s, s * s * cin)
    qh, qw = _cdiv(kh, s), _cdiv(kw, s)
    w2 = jnp.pad(w_hwio, ((0, qh * s - kh), (0, qw * s - kw), (0, 0), (0, 0)))
    ws = w2.reshape(qh, s, qw, s, cin, nw)
    ws = ws.transpose(0, 2, 1, 3, 4, 5).reshape(qh, qw, s * s * cin, nw)
    return xs, ws


def _conv2d_any(x_nhwc, w_hwio, bias, *, stride, padding, dilation, gated, cout,
                activation, compute_dtype, row_tile):
    n, h, w_sp, _ = x_nhwc.shape
    kh, kw = w_hwio.shape[0], w_hwio.shape[1]
    x_pad = jnp.pad(x_nhwc, ((0, 0), (padding, padding), (padding, padding), (0, 0)))
    hp, wp = h + 2 * padding, w_sp + 2 * padding
    oh = (hp - dilation * (kh - 1) - 1) // stride + 1
    ow = (wp - dilation * (kw - 1) - 1) // stride + 1
    if stride == 1:
        y = _conv_core(x_pad, w_hwio, bias, dilation=dilation, gated=gated, cout=cout,
                       activation=activation, compute_dtype=compute_dtype,
                       row_tile=row_tile)
    else:
        assert dilation == 1, "strided dilated convs are not used by RefineGenerator"
        xs, ws = _space_to_depth(x_pad, w_hwio, stride)
        y = _conv_core(xs, ws, bias, dilation=1, gated=gated, cout=cout,
                       activation=activation, compute_dtype=compute_dtype,
                       row_tile=row_tile)
    return y[:, :oh, :ow, :]


def instance_norm(x, eps=1e-5):
    # nn.InstanceNorm2d default: affine=False, per-(n, c) plane, biased var, eps=1e-5
    # TODO(synk): fuse the sum / sum-of-squares statistics into the conv kernel epilogue.
    xf = x.astype(jnp.float32)
    mean = jnp.mean(xf, axis=(1, 2), keepdims=True)
    var = jnp.mean(jnp.square(xf - mean), axis=(1, 2), keepdims=True)
    return ((xf - mean) * jax.lax.rsqrt(var + eps)).astype(x.dtype)


def elu(x):
    return jnp.where(x > 0, x, jnp.expm1(jnp.minimum(x, 0))).astype(x.dtype)


def gated_conv2d(x_nhwc, params, *, kernel_size, stride=1, padding=0, dilation=1,
                 activation="elu", norm="none",
                 compute_dtype=jnp.bfloat16, row_tile=DEFAULT_ROW_TILE):
    del kernel_size  # implied by weight shape
    w, b = params["w"], params["b"]
    wm, bm = params["w_mask"], params["b_mask"]
    cout = w.shape[-1]
    cpad = _round_up(cout, LANE)
    pad_c = cpad - cout
    w_fused = jnp.concatenate(
        [jnp.pad(w, ((0, 0), (0, 0), (0, 0), (0, pad_c))),
         jnp.pad(wm, ((0, 0), (0, 0), (0, 0), (0, pad_c)))], axis=-1)
    b_fused = jnp.concatenate([jnp.pad(b, (0, pad_c)), jnp.pad(bm, (0, pad_c))])
    y = _conv2d_any(x_nhwc, w_fused, b_fused, stride=stride, padding=padding,
                    dilation=dilation, gated=True, cout=cout, activation=activation,
                    compute_dtype=compute_dtype, row_tile=row_tile)
    if norm == "in":
        y = instance_norm(y)
    return y


def conv_block(x_nhwc, params, *, kernel_size, stride=1, padding=0, dilation=1,
               norm="in", activation="elu", transpose=False,
               compute_dtype=jnp.bfloat16, row_tile=DEFAULT_ROW_TILE):
    w, b = params["w"], params["b"]
    cout = w.shape[-1]
    cpad = _round_up(cout, LANE)
    pad_c = cpad - cout
    w_p = jnp.pad(w, ((0, 0), (0, 0), (0, 0), (0, pad_c)))
    b_p = jnp.pad(b, (0, pad_c))
    if transpose:
        # ConvTranspose2d(K=4, s=2, p=1) decomposed into s*s=4 output phases, each a 2x2
        # stride-1 conv on the UN-dilated input (~4x fewer MACs than zero-insertion and a
        # 4x smaller input to stream).  params["w"] holds the equivalent-conv HWIO weight
        # Wc (PyTorch mapping: Wc[kh,kw,ci,co] = W_deconv[ci,co,K-1-kh,K-1-kw]).
        assert kernel_size == 4 and stride == 2 and padding == 1
        n, h, w_sp, _ = x_nhwc.shape
        phases = []
        for a in (0, 1):
            for b2 in (0, 1):
                xp = jnp.pad(x_nhwc, ((0, 0), (1 - a, a), (1 - b2, b2), (0, 0)))
                wab = w_p[a::2, b2::2, :, :]
                yab = _conv_core(xp, wab, b_p, dilation=1, gated=False, cout=cout,
                                 activation="none", compute_dtype=compute_dtype,
                                 row_tile=row_tile)
                phases.append(yab[:, :h, :w_sp, :])
        y = jnp.stack(phases, axis=-2)                       # (n, h, w, 4, cout)
        y = y.reshape(n, h, w_sp, 2, 2, cout)
        y = y.transpose(0, 1, 3, 2, 4, 5).reshape(n, 2 * h, 2 * w_sp, cout)
    else:
        y = _conv2d_any(x_nhwc, w_p, b_p, stride=stride, padding=padding,
                        dilation=dilation, gated=False, cout=cout, activation="none",
                        compute_dtype=compute_dtype, row_tile=row_tile)
    if norm == "in":
        y = instance_norm(y)
    if activation == "elu":
        y = elu(y)
    elif activation != "none":
        raise NotImplementedError(activation)
    return y


def upsample2x_bilinear(x):
    """F.interpolate(scale_factor=2, mode='bilinear', align_corners=True), NHWC."""
    def interp(arr, axis):
        size_in = arr.shape[axis]
        size_out = 2 * size_in
        if size_in == 1:
            return jnp.repeat(arr, size_out, axis=axis)
        pos = jnp.arange(size_out, dtype=jnp.float32) * (size_in - 1) / (size_out - 1)
        i0 = jnp.clip(jnp.floor(pos).astype(jnp.int32), 0, size_in - 2)
        frac = pos - i0.astype(jnp.float32)
        a0 = jnp.take(arr, i0, axis=axis)
        a1 = jnp.take(arr, i0 + 1, axis=axis)
        shape = [1] * arr.ndim
        shape[axis] = size_out
        frac = frac.reshape(shape)
        return a0 * (1.0 - frac) + a1 * frac
    return interp(interp(x, 1), 2).astype(x.dtype)


# -----------------------------------------------------------------------------
# RefineGenerator parameters + forward wiring
# -----------------------------------------------------------------------------
def _init_conv(key, k, cin, cout):
    kw_, kb_ = jax.random.split(key)
    bound = 1.0 / math.sqrt(cin * k * k)
    w = jax.random.uniform(kw_, (k, k, cin, cout), jnp.float32, -bound, bound)
    b = jax.random.uniform(kb_, (cout,), jnp.float32, -bound, bound)
    return w, b


def _refine_configs(img_dim, cnum):
    d, c = img_dim, cnum
    gated = {
        # name: (cin, cout, k, stride, pad, rate, activation, norm)
        "conv1":          (d,      c,      5, 1, 2, 1, "elu",  "in"),
        "conv2":          (c,      2 * c,  3, 2, 1, 1, "elu",  "in"),
        "conv3":          (2 * c,  4 * c,  3, 2, 1, 1, "elu",  "in"),
        "conv4":          (4 * c,  8 * c,  3, 2, 1, 1, "elu",  "in"),
        "conv51_atrous1": (8 * c,  2 * c,  3, 1, 1, 1, "elu",  "in"),
        "conv61_atrous1": (2 * c,  2 * c,  3, 1, 1, 1, "elu",  "in"),
        "conv61_atrous2": (2 * c,  2 * c,  3, 1, 2, 2, "elu",  "in"),
        "conv71_atrous1": (4 * c,  2 * c,  3, 1, 1, 1, "elu",  "in"),
        "conv71_atrous2": (4 * c,  2 * c,  3, 1, 2, 2, "elu",  "in"),
        "conv71_atrous4": (4 * c,  2 * c,  3, 1, 4, 4, "elu",  "in"),
        "conv81_atrous1": (6 * c,  2 * c,  3, 1, 1, 1, "elu",  "in"),
        "conv81_atrous2": (6 * c,  2 * c,  3, 1, 2, 2, "elu",  "in"),
        "conv81_atrous4": (6 * c,  2 * c,  3, 1, 4, 4, "elu",  "in"),
        "conv81_atrous8": (6 * c,  2 * c,  3, 1, 8, 8, "elu",  "in"),
        "conv91":         (8 * c,  8 * c,  3, 1, 1, 1, "elu",  "in"),
        "deconv1_gated":  (16 * c, 4 * c,  3, 1, 1, 1, "elu",  "in"),
        "deconv2_gated":  (8 * c,  2 * c,  3, 1, 1, 1, "elu",  "in"),
        "deconv3_gated":  (4 * c,  c,      3, 1, 1, 1, "elu",  "in"),
        "conv6":          (2 * c,  c // 2, 3, 1, 1, 1, "elu",  "none"),
        "conv7":          (c // 2, d,      3, 1, 1, 1, "none", "none"),
        "conv8":          (d,      d,      3, 1, 1, 1, "elu",  "none"),
        "conv9":          (d,      d,      3, 1, 1, 1, "none", "none"),
    }
    plain = {
        # name: (cin, cout, k, stride, pad, transpose)
        "deconv1":       (16 * c, 8 * c, 4, 2, 1, True),
        "deconv1_conv1": (8 * c,  8 * c, 3, 1, 1, False),
        "deconv1_conv2": (16 * c, 8 * c, 3, 1, 1, False),
        "deconv2":       (8 * c,  4 * c, 4, 2, 1, True),
        "deconv2_conv1": (4 * c,  4 * c, 3, 1, 1, False),
        "deconv2_conv2": (8 * c,  4 * c, 3, 1, 1, False),
        "deconv3":       (4 * c,  2 * c, 4, 2, 1, True),
        "deconv3_conv1": (2 * c,  2 * c, 3, 1, 1, False),
        "deconv3_conv2": (4 * c,  2 * c, 3, 1, 1, False),
    }
    return gated, plain


def init_refine_generator(key, img_dim, cnum):
    gated_cfg, plain_cfg = _refine_configs(img_dim, cnum)
    params = {}
    keys = jax.random.split(key, len(gated_cfg) + len(plain_cfg))
    idx = 0
    for name, (cin, cout, k, *_rest) in gated_cfg.items():
        k1, k2 = jax.random.split(keys[idx]); idx += 1
        w, b = _init_conv(k1, k, cin, cout)
        wm, bm = _init_conv(k2, k, cin, cout)
        params[name] = {"w": w, "b": b, "w_mask": wm, "b_mask": bm}
    for name, (cin, cout, k, *_rest) in plain_cfg.items():
        w, b = _init_conv(keys[idx], k, cin, cout); idx += 1
        params[name] = {"w": w, "b": b}
    return params


def refine_generator_forward(params, x_nchw, img_dim, cnum, *,
                             compute_dtype=jnp.bfloat16, row_tile=DEFAULT_ROW_TILE):
    gated_cfg, plain_cfg = _refine_configs(img_dim, cnum)
    x = jnp.transpose(x_nchw, (0, 2, 3, 1)).astype(jnp.float32)

    def g(name, inp):
        _, _, k, s, p, r, act, nrm = gated_cfg[name]
        return gated_conv2d(inp, params[name], kernel_size=k, stride=s, padding=p,
                            dilation=r, activation=act, norm=nrm,
                            compute_dtype=compute_dtype, row_tile=row_tile)

    def c(name, inp):
        _, _, k, s, p, tr = plain_cfg[name]
        return conv_block(inp, params[name], kernel_size=k, stride=s, padding=p,
                          norm="in", activation="elu", transpose=tr,
                          compute_dtype=compute_dtype, row_tile=row_tile)

    # TODO(synk): split the fused weight along Cin and pass concat operands as separate
    # kernel inputs to avoid materialising these HBM concatenations.
    cat = lambda *xs: jnp.concatenate(xs, axis=-1)
    up = upsample2x_bilinear

    x1 = g("conv1", x)
    x2 = g("conv2", x1)
    x3 = g("conv3", x2)
    x4 = g("conv4", x3)
    x51 = g("conv51_atrous1", x4)
    x61_1 = g("conv61_atrous1", x51)
    x61_2 = g("conv61_atrous2", x51)
    c61 = cat(x61_1, x61_2)
    x71_1 = g("conv71_atrous1", c61)
    x71_2 = g("conv71_atrous2", c61)
    x71_4 = g("conv71_atrous4", c61)
    c71 = cat(x71_1, x71_2, x71_4)
    x81_1 = g("conv81_atrous1", c71)
    x81_2 = g("conv81_atrous2", c71)
    x81_4 = g("conv81_atrous4", c71)
    x81_8 = g("conv81_atrous8", c71)
    x91 = g("conv91", cat(x81_1, x81_2, x81_4, x81_8))

    tmp = c("deconv1", cat(x91, x4))
    xd1_1 = c("deconv1_conv1", tmp)
    xd1_2 = c("deconv1_conv2", cat(up(x91), up(x4)))
    xd1 = g("deconv1_gated", cat(xd1_1, xd1_2))

    tmp = c("deconv2", cat(xd1, x3))
    xd2_1 = c("deconv2_conv1", tmp)
    xd2_2 = c("deconv2_conv2", cat(up(xd1), up(x3)))
    xd2 = g("deconv2_gated", cat(xd2_1, xd2_2))

    tmp = c("deconv3", cat(xd2, x2))
    xd3_1 = c("deconv3_conv1", tmp)
    xd3_2 = c("deconv3_conv2", cat(up(xd2), up(x2)))
    xd3 = g("deconv3_gated", cat(xd3_1, xd3_2))

    x6 = g("conv6", cat(xd3, x1))
    x7 = g("conv7", x6)
    x8 = g("conv8", x7)
    out = jnp.tanh(g("conv9", x8).astype(jnp.float32))
    return jnp.transpose(out, (0, 3, 1, 2))


# -----------------------------------------------------------------------------
# Pure-JAX references for kernel self-checks
# -----------------------------------------------------------------------------
def _gated_conv_reference(x_nhwc, prm, *, stride, padding, dilation, activation, norm):
    dn = ("NHWC", "HWIO", "NHWC")

    def conv(w, b):
        y = jax.lax.conv_general_dilated(
            x_nhwc, w, window_strides=(stride, stride),
            padding=[(padding, padding), (padding, padding)],
            rhs_dilation=(dilation, dilation), dimension_numbers=dn)
        return y + b

    feat = conv(prm["w"], prm["b"])
    gate = conv(prm["w_mask"], prm["b_mask"])
    if activation == "elu":
        feat = elu(feat)
    y = feat * jax.nn.sigmoid(gate)
    if norm == "in":
        y = instance_norm(y)
    return y


def _plain_conv_reference(x_nhwc, prm, *, stride, padding, dilation):
    dn = ("NHWC", "HWIO", "NHWC")
    y = jax.lax.conv_general_dilated(
        x_nhwc, prm["w"], window_strides=(stride, stride),
        padding=[(padding, padding), (padding, padding)],
        rhs_dilation=(dilation, dilation), dimension_numbers=dn)
    return y + prm["b"]


def _deconv_reference(x_nhwc, prm):
    # zero-insertion (lhs_dilation=2) + pad 2 + valid 4x4 conv == the equivalent-conv form
    # of ConvTranspose2d(4, stride=2, padding=1) for our stored HWIO weight.
    dn = ("NHWC", "HWIO", "NHWC")
    y = jax.lax.conv_general_dilated(
        x_nhwc, prm["w"], window_strides=(1, 1),
        padding=[(2, 2), (2, 2)], lhs_dilation=(2, 2), dimension_numbers=dn)
    return y + prm["b"]


if __name__ == "__main__":
    key = jax.random.PRNGKey(0)
    k1, k2, k3, k4, k5, k6 = jax.random.split(key, 6)

    # ---- kernel self-checks (f32 compute path, tight tolerance) ----
    xc = jax.random.normal(k1, (2, 9, 11, 6), jnp.float32)
    w, b = _init_conv(k2, 3, 6, 8)
    wm, bm = _init_conv(k3, 3, 6, 8)
    prm = {"w": w, "b": b, "w_mask": wm, "b_mask": bm}

    got = gated_conv2d(xc, prm, kernel_size=3, stride=1, padding=2, dilation=2,
                       activation="elu", norm="none", compute_dtype=jnp.float32)
    want = _gated_conv_reference(xc, prm, stride=1, padding=2, dilation=2,
                                 activation="elu", norm="none")
    assert float(jnp.max(jnp.abs(got - want))) < 5e-3, "gated dilated conv mismatch"

    got = gated_conv2d(xc, prm, kernel_size=3, stride=2, padding=1, dilation=1,
                       activation="elu", norm="none", compute_dtype=jnp.float32)
    want = _gated_conv_reference(xc, prm, stride=2, padding=1, dilation=1,
                                 activation="elu", norm="none")
    assert float(jnp.max(jnp.abs(got - want))) < 5e-3, "gated strided conv mismatch"

    wp_, bp_ = _init_conv(k4, 3, 6, 5)
    prm_p = {"w": wp_, "b": bp_}
    got = conv_block(xc, prm_p, kernel_size=3, stride=1, padding=1,
                     norm="none", activation="none", compute_dtype=jnp.float32)
    want = _plain_conv_reference(xc, prm_p, stride=1, padding=1, dilation=1)
    assert float(jnp.max(jnp.abs(got - want))) < 5e-3, "plain conv mismatch"

    wt_, bt_ = _init_conv(k6, 4, 6, 8)
    prm_t = {"w": wt_, "b": bt_}
    got = conv_block(xc, prm_t, kernel_size=4, stride=2, padding=1,
                     norm="none", activation="none", transpose=True,
                     compute_dtype=jnp.float32)
    want = _deconv_reference(xc, prm_t)
    assert got.shape == want.shape, "transposed conv shape mismatch"
    assert float(jnp.max(jnp.abs(got - want))) < 5e-3, "transposed conv mismatch"

    # ---- full RefineGenerator forward (bf16 MXU inputs, f32 accumulate/epilogue) ----
    batch, img_dim, cnum, hw = 2, 4, 8, 32
    params = init_refine_generator(k5, img_dim, cnum)
    x = jax.random.normal(jax.random.PRNGKey(0), (batch, img_dim, hw, hw), jnp.float32)
    y = refine_generator_forward(params, x, img_dim, cnum, compute_dtype=jnp.bfloat16)
    y = jax.block_until_ready(y)
    assert y.shape == (batch, img_dim, hw, hw)
    assert bool(jnp.all(jnp.isfinite(y)))
    print("KERNEL_OK")
</pallas_src>

<mosaic_0001>
module attributes {stable_mosaic.version = 11 : i64} {
  func.func @kernel(%arg0: i32, %arg1: i32, %arg2: memref<1x144x6xf32, #tpu.memory_space<vmem>>, %arg3: memref<1x1x72x6xf32, #tpu.memory_space<vmem>>, %arg4: memref<54x256xf32, #tpu.memory_space<vmem>>, %arg5: memref<1x256xf32, #tpu.memory_space<vmem>>, %arg6: memref<1x144x128xf32, #tpu.memory_space<vmem>>, %arg7: memref<144x54xf32, #tpu.memory_space<vmem>>) attributes {dimension_semantics = [#tpu.dimension_semantics<parallel>, #tpu.dimension_semantics<parallel>], iteration_bounds = array<i64: 2, 1>, scalar_prefetch = 0 : i64, scratch_operands = 1 : i64, tpu.core_type = #tpu.core_type<tc>, window_params = [{transform_indices = @transform_0, window_bounds = array<i64: 1, 144, 6>}, {transform_indices = @transform_1, window_bounds = array<i64: 1, 1, 72, 6>}, {pipeline_mode = #tpu.pipeline_mode<synchronous>, transform_indices = @transform_2, window_bounds = array<i64: 54, 256>}, {pipeline_mode = #tpu.pipeline_mode<synchronous>, transform_indices = @transform_3, window_bounds = array<i64: 1, 256>}, {transform_indices = @transform_4, window_bounds = array<i64: 1, 144, 128>}]} {
    %c0 = arith.constant 0 : index
    %c0_0 = arith.constant 0 : index
    %c0_1 = arith.constant 0 : index
    %0 = vector.load %arg2[%c0, %c0_0, %c0_1] : memref<1x144x6xf32, #tpu.memory_space<vmem>>, vector<1x144x6xf32>
    %1 = vector.shape_cast %0 : vector<1x144x6xf32> to vector<144x6xf32>
    %c0_2 = arith.constant 0 : index
    %c0_3 = arith.constant 0 : index
    %2 = vector.load %arg7[%c0_2, %c0_3] : memref<144x54xf32, #tpu.memory_space<vmem>>, vector<144x6xf32>
    tpu.vector_store %arg7[%c0_2, %c0_3], %1 {strides = array<i32>} : memref<144x54xf32, #tpu.memory_space<vmem>>, vector<144x6xf32>,
    %c0_4 = arith.constant 0 : index
    %c2 = arith.constant 2 : index
    %c0_5 = arith.constant 0 : index
    %3 = vector.load %arg2[%c0_4, %c2, %c0_5] : memref<1x144x6xf32, #tpu.memory_space<vmem>>, vector<1x142x6xf32>
    %4 = vector.shape_cast %3 : vector<1x142x6xf32> to vector<142x6xf32>
    %c0_6 = arith.constant 0 : index
    %c6 = arith.constant 6 : index
    %5 = vector.load %arg7[%c0_6, %c6] : memref<144x54xf32, #tpu.memory_space<vmem>>, vector<142x6xf32>
    tpu.vector_store %arg7[%c0_6, %c6], %4 {strides = array<i32>} : memref<144x54xf32, #tpu.memory_space<vmem>>, vector<142x6xf32>,
    %c0_7 = arith.constant 0 : index
    %c0_8 = arith.constant 0 : index
    %c0_9 = arith.constant 0 : index
    %c0_10 = arith.constant 0 : index
    %6 = vector.load %arg3[%c0_7, %c0_8, %c0_9, %c0_10] : memref<1x1x72x6xf32, #tpu.memory_space<vmem>>, vector<1x1x2x6xf32>
    %7 = vector.shape_cast %6 : vector<1x1x2x6xf32> to vector<2x6xf32>
    %c142 = arith.constant 142 : index
    %c6_11 = arith.constant 6 : index
    %8 = vector.load %arg7[%c142, %c6_11] : memref<144x54xf32, #tpu.memory_space<vmem>>, vector<2x6xf32>
    tpu.vector_store %arg7[%c142, %c6_11], %7 {strides = array<i32>} : memref<144x54xf32, #tpu.memory_space<vmem>>, vector<2x6xf32>,
    %c0_12 = arith.constant 0 : index
    %c4 = arith.constant 4 : index
    %c0_13 = arith.constant 0 : index
    %9 = vector.load %arg2[%c0_12, %c4, %c0_13] : memref<1x144x6xf32, #tpu.memory_space<vmem>>, vector<1x140x6xf32>
    %10 = vector.shape_cast %9 : vector<1x140x6xf32> to vector<140x6xf32>
    %c0_14 = arith.constant 0 : index
    %c12 = arith.constant 12 : index
    %11 = vector.load %arg7[%c0_14, %c12] : memref<144x54xf32, #tpu.memory_space<vmem>>, vector<140x6xf32>
    tpu.vector_store %arg7[%c0_14, %c12], %10 {strides = array<i32>} : memref<144x54xf32, #tpu.memory_space<vmem>>, vector<140x6xf32>,
    %c0_15 = arith.constant 0 : index
    %c0_16 = arith.constant 0 : index
    %c0_17 = arith.constant 0 : index
    %c0_18 = arith.constant 0 : index
    %12 = vector.load %arg3[%c0_15, %c0_16, %c0_17, %c0_18] : memref<1x1x72x6xf32, #tpu.memory_space<vmem>>, vector<1x1x4x6xf32>
    %13 = vector.shape_cast %12 : vector<1x1x4x6xf32> to vector<4x6xf32>
    %c140 = arith.constant 140 : index
    %c12_19 = arith.constant 12 : index
    %14 = vector.load %arg7[%c140, %c12_19] : memref<144x54xf32, #tpu.memory_space<vmem>>, vector<4x6xf32>
    tpu.vector_store %arg7[%c140, %c12_19], %13 {strides = array<i32>} : memref<144x54xf32, #tpu.memory_space<vmem>>, vector<4x6xf32>,
    %c0_20 = arith.constant 0 : index
    %c32 = arith.constant 32 : index
    %c0_21 = arith.constant 0 : index
    %15 = vector.load %arg2[%c0_20, %c32, %c0_21] : memref<1x144x6xf32, #tpu.memory_space<vmem>>, vector<1x112x6xf32>
    %16 = vector.shape_cast %15 : vector<1x112x6xf32> to vector<112x6xf32>
    %c0_22 = arith.constant 0 : index
    %c18 = arith.constant 18 : index
    %17 = vector.load %arg7[%c0_22, %c18] : memref<144x54xf32, #tpu.memory_space<vmem>>, vector<112x6xf32>
    tpu.vector_store %arg7[%c0_22, %c18], %16 {strides = array<i32>} : memref<144x54xf32, #tpu.memory_space<vmem>>, vector<112x6xf32>,
    %c0_23 = arith.constant 0 : index
    %c0_24 = arith.constant 0 : index
    %c0_25 = arith.constant 0 : index
    %c0_26 = arith.constant 0 : index
    %18 = vector.load %arg3[%c0_23, %c0_24, %c0_25, %c0_26] : memref<1x1x72x6xf32, #tpu.memory_space<vmem>>, vector<1x1x32x6xf32>
    %19 = vector.shape_cast %18 : vector<1x1x32x6xf32> to vector<32x6xf32>
    %c112 = arith.constant 112 : index
    %c18_27 = arith.constant 18 : index
    %20 = vector.load %arg7[%c112, %c18_27] : memref<144x54xf32, #tpu.memory_space<vmem>>, vector<32x6xf32>
    tpu.vector_store %arg7[%c112, %c18_27], %19 {strides = array<i32>} : memref<144x54xf32, #tpu.memory_space<vmem>>, vector<32x6xf32>,
    %c0_28 = arith.constant 0 : index
    %c34 = arith.constant 34 : index
    %c0_29 = arith.constant 0 : index
    %21 = vector.load %arg2[%c0_28, %c34, %c0_29] : memref<1x144x6xf32, #tpu.memory_space<vmem>>, vector<1x110x6xf32>
    %22 = vector.shape_cast %21 : vector<1x110x6xf32> to vector<110x6xf32>
    %c0_30 = arith.constant 0 : index
    %c24 = arith.constant 24 : index
    %23 = vector.load %arg7[%c0_30, %c24] : memref<144x54xf32, #tpu.memory_space<vmem>>, vector<110x6xf32>
    tpu.vector_store %arg7[%c0_30, %c24], %22 {strides = array<i32>} : memref<144x54xf32, #tpu.memory_space<vmem>>, vector<110x6xf32>,
    %c0_31 = arith.constant 0 : index
    %c0_32 = arith.constant 0 : index
    %c0_33 = arith.constant 0 : index
    %c0_34 = arith.constant 0 : index
    %24 = vector.load %arg3[%c0_31, %c0_32, %c0_33, %c0_34] : memref<1x1x72x6xf32, #tpu.memory_space<vmem>>, vector<1x1x34x6xf32>
    %25 = vector.shape_cast %24 : vector<1x1x34x6xf32> to vector<34x6xf32>
    %c110 = arith.constant 110 : index
    %c24_35 = arith.constant 24 : index
    %26 = vector.load %arg7[%c110, %c24_35] : memref<144x54xf32, #tpu.memory_space<vmem>>, vector<34x6xf32>
    tpu.vector_store %arg7[%c110, %c24_35], %25 {strides = array<i32>} : memref<144x54xf32, #tpu.memory_space<vmem>>, vector<34x6xf32>,
    %c0_36 = arith.constant 0 : index
    %c36 = arith.constant 36 : index
    %c0_37 = arith.constant 0 : index
    %27 = vector.load %arg2[%c0_36, %c36, %c0_37] : memref<1x144x6xf32, #tpu.memory_space<vmem>>, vector<1x108x6xf32>
    %28 = vector.shape_cast %27 : vector<1x108x6xf32> to vector<108x6xf32>
    %c0_38 = arith.constant 0 : index
    %c30 = arith.constant 30 : index
    %29 = vector.load %arg7[%c0_38, %c30] : memref<144x54xf32, #tpu.memory_space<vmem>>, vector<108x6xf32>
    tpu.vector_store %arg7[%c0_38, %c30], %28 {strides = array<i32>} : memref<144x54xf32, #tpu.memory_space<vmem>>, vector<108x6xf32>,
    %c0_39 = arith.constant 0 : index
    %c0_40 = arith.constant 0 : index
    %c0_41 = arith.constant 0 : index
    %c0_42 = arith.constant 0 : index
    %30 = vector.load %arg3[%c0_39, %c0_40, %c0_41, %c0_42] : memref<1x1x72x6xf32, #tpu.memory_space<vmem>>, vector<1x1x36x6xf32>
    %31 = vector.shape_cast %30 : vector<1x1x36x6xf32> to vector<36x6xf32>
    %c108 = arith.constant 108 : index
    %c30_43 = arith.constant 30 : index
    %32 = vector.load %arg7[%c108, %c30_43] : memref<144x54xf32, #tpu.memory_space<vmem>>, vector<36x6xf32>
    tpu.vector_store %arg7[%c108, %c30_43], %31 {strides = array<i32>} : memref<144x54xf32, #tpu.memory_space<vmem>>, vector<36x6xf32>,
    %c0_44 = arith.constant 0 : index
    %c64 = arith.constant 64 : index
    %c0_45 = arith.constant 0 : index
    %33 = vector.load %arg2[%c0_44, %c64, %c0_45] : memref<1x144x6xf32, #tpu.memory_space<vmem>>, vector<1x80x6xf32>
    %34 = vector.shape_cast %33 : vector<1x80x6xf32> to vector<80x6xf32>
    %c0_46 = arith.constant 0 : index
    %c36_47 = arith.constant 36 : index
    %35 = vector.load %arg7[%c0_46, %c36_47] : memref<144x54xf32, #tpu.memory_space<vmem>>, vector<80x6xf32>
    tpu.vector_store %arg7[%c0_46, %c36_47], %34 {strides = array<i32>} : memref<144x54xf32, #tpu.memory_space<vmem>>, vector<80x6xf32>,
    %c0_48 = arith.constant 0 : index
    %c0_49 = arith.constant 0 : index
    %c0_50 = arith.constant 0 : index
    %c0_51 = arith.constant 0 : index
    %36 = vector.load %arg3[%c0_48, %c0_49, %c0_50, %c0_51] : memref<1x1x72x6xf32, #tpu.memory_space<vmem>>, vector<1x1x64x6xf32>
    %37 = vector.shape_cast %36 : vector<1x1x64x6xf32> to vector<64x6xf32>
    %c80 = arith.constant 80 : index
    %c36_52 = arith.constant 36 : index
    %38 = vector.load %arg7[%c80, %c36_52] : memref<144x54xf32, #tpu.memory_space<vmem>>, vector<64x6xf32>
    tpu.vector_store %arg7[%c80, %c36_52], %37 {strides = array<i32>} : memref<144x54xf32, #tpu.memory_space<vmem>>, vector<64x6xf32>,
    %c0_53 = arith.constant 0 : index
    %c66 = arith.constant 66 : index
    %c0_54 = arith.constant 0 : index
    %39 = vector.load %arg2[%c0_53, %c66, %c0_54] : memref<1x144x6xf32, #tpu.memory_space<vmem>>, vector<1x78x6xf32>
    %40 = vector.shape_cast %39 : vector<1x78x6xf32> to vector<78x6xf32>
    %c0_55 = arith.constant 0 : index
    %c42 = arith.constant 42 : index
    %41 = vector.load %arg7[%c0_55, %c42] : memref<144x54xf32, #tpu.memory_space<vmem>>, vector<78x6xf32>
    tpu.vector_store %arg7[%c0_55, %c42], %40 {strides = array<i32>} : memref<144x54xf32, #tpu.memory_space<vmem>>, vector<78x6xf32>,
    %c0_56 = arith.constant 0 : index
    %c0_57 = arith.constant 0 : index
    %c0_58 = arith.constant 0 : index
    %c0_59 = arith.constant 0 : index
    %42 = vector.load %arg3[%c0_56, %c0_57, %c0_58, %c0_59] : memref<1x1x72x6xf32, #tpu.memory_space<vmem>>, vector<1x1x66x6xf32>
    %43 = vector.shape_cast %42 : vector<1x1x66x6xf32> to vector<66x6xf32>
    %c78 = arith.constant 78 : index
    %c42_60 = arith.constant 42 : index
    %44 = vector.load %arg7[%c78, %c42_60] : memref<144x54xf32, #tpu.memory_space<vmem>>, vector<66x6xf32>
    tpu.vector_store %arg7[%c78, %c42_60], %43 {strides = array<i32>} : memref<144x54xf32, #tpu.memory_space<vmem>>, vector<66x6xf32>,
    %c0_61 = arith.constant 0 : index
    %c68 = arith.constant 68 : index
    %c0_62 = arith.constant 0 : index
    %45 = vector.load %arg2[%c0_61, %c68, %c0_62] : memref<1x144x6xf32, #tpu.memory_space<vmem>>, vector<1x76x6xf32>
    %46 = vector.shape_cast %45 : vector<1x76x6xf32> to vector<76x6xf32>
    %c0_63 = arith.constant 0 : index
    %c48 = arith.constant 48 : index
    %47 = vector.load %arg7[%c0_63, %c48] : memref<144x54xf32, #tpu.memory_space<vmem>>, vector<76x6xf32>
    tpu.vector_store %arg7[%c0_63, %c48], %46 {strides = array<i32>} : memref<144x54xf32, #tpu.memory_space<vmem>>, vector<76x6xf32>,
    %c0_64 = arith.constant 0 : index
    %c0_65 = arith.constant 0 : index
    %c0_66 = arith.constant 0 : index
    %c0_67 = arith.constant 0 : index
    %48 = vector.load %arg3[%c0_64, %c0_65, %c0_66, %c0_67] : memref<1x1x72x6xf32, #tpu.memory_space<vmem>>, vector<1x1x68x6xf32>
    %49 = vector.shape_cast %48 : vector<1x1x68x6xf32> to vector<68x6xf32>
    %c76 = arith.constant 76 : index
    %c48_68 = arith.constant 48 : index
    %50 = vector.load %arg7[%c76, %c48_68] : memref<144x54xf32, #tpu.memory_space<vmem>>, vector<68x6xf32>
    tpu.vector_store %arg7[%c76, %c48_68], %49 {strides = array<i32>} : memref<144x54xf32, #tpu.memory_space<vmem>>, vector<68x6xf32>,
    %c0_69 = arith.constant 0 : index
    %c0_70 = arith.constant 0 : index
    %51 = vector.load %arg7[%c0_69, %c0_70] : memref<144x54xf32, #tpu.memory_space<vmem>>, vector<144x54xf32>
    %c0_71 = arith.constant 0 : index
    %c0_72 = arith.constant 0 : index
    %52 = vector.load %arg4[%c0_71, %c0_72] : memref<54x256xf32, #tpu.memory_space<vmem>>, vector<54x256xf32>
    %cst = arith.constant dense<0.000000e+00> : vector<144x256xf32>
    %53 = tpu.matmul %51, %52, %cst {dimension_numbers = #tpu.dot_dimension_numbers<[1], [0], [0], [1], [0, 0, 1, 1], [], []>} : vector<144x54xf32>, vector<54x256xf32>, vector<144x256xf32> -> vector<144x256xf32>
    %c0_73 = arith.constant 0 : index
    %c0_74 = arith.constant 0 : index
    %54 = vector.load %arg5[%c0_73, %c0_74] : memref<1x256xf32, #tpu.memory_space<vmem>>, vector<1x256xf32>
    %55 = vector.broadcast %54 : vector<1x256xf32> to vector<144x256xf32>
    %56 = arith.addf %53, %55 : vector<144x256xf32>
    %57 = vector.extract_strided_slice %56 {offsets = [0, 0], sizes = [144, 128], strides = [1, 1]} : vector<144x256xf32> to vector<144x128xf32>
    %58 = vector.extract_strided_slice %56 {offsets = [0, 128], sizes = [144, 128], strides = [1, 1]} : vector<144x256xf32> to vector<144x128xf32>
    %cst_75 = arith.constant 0.000000e+00 : f32
    %59 = vector.broadcast %cst_75 : f32 to vector<144x128xf32>
    %60 = arith.cmpf ogt, %57, %59 : vector<144x128xf32>
    %cst_76 = arith.constant 0.000000e+00 : f32
    %61 = vector.broadcast %cst_76 : f32 to vector<144x128xf32>
    %62 = arith.minimumf %57, %61 : vector<144x128xf32>
    %63 = math.exp %62 : vector<144x128xf32>
    %cst_77 = arith.constant 1.000000e+00 : f32
    %64 = vector.broadcast %cst_77 : f32 to vector<144x128xf32>
    %65 = arith.subf %63, %64 : vector<144x128xf32>
    %66 = arith.select %60, %57, %65 : vector<144x128xi1>, vector<144x128xf32>
    %67 = arith.negf %58 : vector<144x128xf32>
    %68 = math.exp %67 : vector<144x128xf32>
    %cst_78 = arith.constant 1.000000e+00 : f32
    %69 = vector.broadcast %cst_78 : f32 to vector<144x128xf32>
    %70 = arith.addf %69, %68 : vector<144x128xf32>
    %71 = arith.divf %69, %70 : vector<144x128xf32>
    %72 = arith.mulf %66, %71 : vector<144x128xf32>
    %c0_79 = arith.constant 0 : index
    %c0_80 = arith.constant 0 : index
    %c0_81 = arith.constant 0 : index
    %73 = vector.load %arg6[%c0_79, %c0_80, %c0_81] : memref<1x144x128xf32, #tpu.memory_space<vmem>>, vector<1x144x128xf32>
    %74 = vector.shape_cast %73 : vector<1x144x128xf32> to vector<144x128xf32>
    %75 = vector.shape_cast %72 : vector<144x128xf32> to vector<1x144x128xf32>
    tpu.vector_store %arg6[%c0_79, %c0_80, %c0_81], %75 {strides = array<i32>} : memref<1x144x128xf32, #tpu.memory_space<vmem>>, vector<1x144x128xf32>,
    return
  }
  func.func @transform_0(%arg0: i32, %arg1: i32) -> (i32, i32, i32) {
    %c0_i32 = arith.constant 0 : i32
    %c0_i32_0 = arith.constant 0 : i32
    return %arg0, %arg1, %c0_i32 : i32, i32, i32
  }
  func.func @transform_1(%arg0: i32, %arg1: i32) -> (i32, i32, i32, i32) {
    %c0_i32 = arith.constant 0 : i32
    %c0_i32_0 = arith.constant 0 : i32
    %c0_i32_1 = arith.constant 0 : i32
    return %arg0, %arg1, %c0_i32, %c0_i32_0 : i32, i32, i32, i32
  }
  func.func @transform_2(%arg0: i32, %arg1: i32) -> (i32, i32) {
    %c0_i32 = arith.constant 0 : i32
    %c0_i32_0 = arith.constant 0 : i32
    %c0_i32_1 = arith.constant 0 : i32
    return %c0_i32, %c0_i32_0 : i32, i32
  }
  func.func @transform_3(%arg0: i32, %arg1: i32) -> (i32, i32) {
    %c0_i32 = arith.constant 0 : i32
    %c0_i32_0 = arith.constant 0 : i32
    %c0_i32_1 = arith.constant 0 : i32
    return %c0_i32, %c0_i32_0 : i32, i32
  }
  func.func @transform_4(%arg0: i32, %arg1: i32) -> (i32, i32, i32) {
    %c0_i32 = arith.constant 0 : i32
    %c0_i32_0 = arith.constant 0 : i32
    return %arg0, %arg1, %c0_i32 : i32, i32, i32
  }
}

</mosaic_0001>

<bundles_post_ra>
// kernel: tpu_custom_call.1
= control target key start
LH: loop header
LB: loop body
LE: loop exit
PB: predicated region body
PF: predicated region fallthrough
CT: control target
= control target key end

     0   :  { %9 = vsyncpa [#allocation4], 0  ;;  %s3107_s0 = inlined_call_operand.vmem [shape: f32[2,144,6], index: 0, kind: input, shape index: {}]   ;;  %s3108_s1 = inlined_call_operand.vmem [shape: f32[2,1,72,6], index: 1, kind: input, shape index: {}]   ;;  %s3109_s2 = inlined_call_operand.vmem [shape: f32[54,256], index: 2, kind: input, shape index: {}]   ;;  %s3110_s3 = inlined_call_operand.vmem [shape: f32[1,256], index: 3, kind: input, shape index: {}]   ;;  %s3111_s4 = inlined_call_operand.hbm [shape: f32[2,144,128], index: 4, kind: output, shape index: {}]  }
   0x1   :  { %11 = vsyncpa [#allocation4 + $0x1], 0  ;;  %s2243_s15 = smov 0   ;;  %s2245_s16 = smov 0  }
   0x2   :  { %s2247_s17 = smov 0   ;;  %s2249_s18 = smov 0  }
   0x3   :  { %s2251_s19 = smov 0   ;;  %s2253_s20 = smov 0  }
   0x4 LB: > { %s1862_s21 = sadd.s32 4294967295, %s2204_s20   ;;  %s1863_s22 = sadd.s32 4294967294, %s2204_s20   ;;  %s2204_s20 = sphi %s2253_s20, %s17_s20   ;;  %s2200_s19 = sphi %s2251_s19, %s3124_s19   ;;  %s2196_s18 = sphi %s2249_s18, %s3123_s18   ;;  %s2192_s17 = sphi %s2247_s17, %s3122_s17   ;;  %s2188_s16 = sphi %s2245_s16, %s3121_s16   ;;  %s2184_s15 = sphi %s2243_s15, %s3120_s15  }
   0x5   : > { %s29_s23 = sadd.s32 1, %s2200_s19  ;;  %s136_s24 = sadd.s32 1, %s2192_s17 }
   0x6   : > { %p31_p0 = scmp.ge.s32.totalorder %s29_s23, 2  ;;  %p146_p1 = scmp.ne.s32.totalorder %s2192_s17, %s2188_s16 }
   0x7   : > { %p147_p2 = scmp.eq.s32.totalorder %s1862_s21, 1  ;;  %p152_p3 = scmp.ne.s32.totalorder %s2188_s16, %s2184_s15 }
   0x8   : > { %s3126_s23 = smov (%p31_p0, %s29_s23), 0  ;;  %p153_p5 = scmp.eq.s32.totalorder %s1863_s22, 1 }
   0x9   : > { %p2283_p4 = por %p147_p2, %p146_p1  ;;  %s131_s26 = ssub.s32 %s2200_s19, %s3126_s23 }
   0xa   : > { %p1866_p6 = scmp.ge.s32.totalorder %s2204_s20, 1  ;;  %p134_p7 = scmp.eq.s32.totalorder %s131_s26, 0 }
   0xb   : > { %p2290_p8 = por %p153_p5, %p152_p3  ;;  %p202_p9 = scmp.lt.s32.totalorder %s2204_s20, 3 }
   0xc   : > { %s2296_s28 = scalar_select %p134_p7, %s2192_s17, %s136_s24  }
   0xd   : > { %p203_p10 = pnand %p1866_p6, %p202_p9 }
   0xe   : > { %p242_p11 = scmp.lt.s32.totalorder (!%p203_p10), %s2196_s18, 1  ;;  %s3114_s8 = smov (!%p203_p10), 6   ;;  %vm279_vm0 = vcmask (!%p203_p10), 48128   ;;  %v1234_v28 = vld [vmem:[%s3109_s2 + $0x8] sm:$0xff] (!%p203_p10)  ;;  %v1236_v29 = vld [vmem:[%s3109_s2 + $0x18] sm:$0xff] (!%p203_p10)  ;;  %v1233_v31 = vld [vmem:[%s3109_s2] sm:$0xff] (!%p203_p10) }
   0xf   : > { %206 = sbr.rel (%p203_p10) target bundleno = 709 (0x2c5), region = 36  ;;  %s2207_s9 = smov (!%p203_p10), 12   ;;  %v1928_v30 = vpack.c.bf16 (!%p203_p10), %v1236_v29, %v1234_v28  ;;  %v1235_v32 = vld [vmem:[%s3109_s2 + $0x10] sm:$0xff] (!%p203_p10)  ;;  %v1238_v36 = vld [vmem:[%s3109_s2 + $0x28] sm:$0xff] (!%p203_p10)  ;;  %v1240_v37 = vld [vmem:[%s3109_s2 + $0x38] sm:$0xff] (!%p203_p10)  ;;  %vm1314_vm1 = vcmask (!%p203_p10), 1045504  }
  0x10   : > { %s2208_s10 = smov (!%p203_p10), 18   ;;  %s2209_s11 = smov (!%p203_p10), 24   ;;  %v1930_v33 = vpack.c.bf16 (!%p203_p10), %v1235_v32, %v1233_v31  ;;  %v1932_v38 = vpack.c.bf16 (!%p203_p10), %v1240_v37, %v1238_v36  ;;  %v1237_v39 = vld [vmem:[%s3109_s2 + $0x20] sm:$0xff] (!%p203_p10)  ;;  %v1239_v40 = vld [vmem:[%s3109_s2 + $0x30] sm:$0xff] (!%p203_p10)  ;;  %v1242_v42 = vld [vmem:[%s3109_s2 + $0x48] sm:$0xff] (!%p203_p10)  ;;  %v2213_v53 = vmov (!%p203_p10), 0.0  }
  0x11   : > { %s3112_s12 = smov (!%p203_p10), 30   ;;  %1929 = vmatprep.subr.bf16.mxu0 (!%p203_p10), %v1928_v30  ;;  %1940 = vmatprep.subr.bf16.mxu1 (!%p203_p10), %v1928_v30  ;;  %v1934_v41 = vpack.c.bf16 (!%p203_p10), %v1239_v40, %v1237_v39  ;;  %v1244_v43 = vld [vmem:[%s3109_s2 + $0x58] sm:$0xff] (!%p203_p10)  ;;  %v1241_v45 = vld [vmem:[%s3109_s2 + $0x40] sm:$0xff] (!%p203_p10)  ;;  %v1243_v46 = vld [vmem:[%s3109_s2 + $0x50] sm:$0xff] (!%p203_p10)  ;;  %s2214_s21 = smov (!%p203_p10), 48   ;;  %vm388_vm2 = vcmask (!%p203_p10), 97328  }
  0x12   : > { %1931 = vmatpush1.bf16.msra.mxu0 (!%p203_p10), %v1930_v33  ;;  %1944 = vmatpush1.bf16.msra.mxu1 (!%p203_p10), %v1930_v33  ;;  %v1936_v44 = vpack.c.bf16 (!%p203_p10), %v1244_v43, %v1242_v42  ;;  %v1938_v47 = vpack.c.bf16 (!%p203_p10), %v1243_v46, %v1241_v45  ;;  %v1246_v50 = vld [vmem:[%s3109_s2 + $0x68] sm:$0x3f] (!%p203_p10)  ;;  %v1245_v51 = vld [vmem:[%s3109_s2 + $0x60] sm:$0x3f] (!%p203_p10)  ;;  %vm505_vm3 = vcmask (!%p203_p10), 146528   ;;  %vm601_vm4 = vcmask (!%p203_p10), 195728  }
  0x13   : > { %1933 = vmatprep.subr.bf16.mxu0 (!%p203_p10), %v1932_v38  ;;  %1941 = vmatprep.subr.bf16.mxu1 (!%p203_p10), %v1932_v38  ;;  %vm710_vm5 = vcmask (!%p203_p10), 244928   ;;  %vm827_vm6 = vcmask (!%p203_p10), 294128   ;;  %vm923_vm7 = vcmask (!%p203_p10), 343328   ;;  %vm1042_vm8 = vcmask (!%p203_p10), 390480   ;;  %s2215_s6 = smov (!%p203_p10), [#allocation3]  }
  0x14   : > { %1385 = vmatprep.mubr.f32.mxu0 (!%p203_p10), %v2213_v53  ;;  %1439 = vmatprep.mubr.f32.mxu1 (!%p203_p10), %v2213_v53  ;;  %vm1032_vm9 = vcmask (!%p203_p10), 392528   ;;  %vm1149_vm10 = vcmask (!%p203_p10), 441728   ;;  %vm1159_vm11 = vcmask (!%p203_p10), 437632   ;;  %vm1259_vm12 = vcmask (!%p203_p10), 441344   ;;  %s2130_s14 = sshll.u32 (!%p203_p10), %s2215_s6, 4  ;;  %s2131_s14 = int_to_ptr.vmem [resolvable:$false] %s2130_s14 }
  0x15   : > { %vm724_vm13 = vcmask (!%p203_p10), 242880   ;;  %vm841_vm14 = vcmask (!%p203_p10), 290032   ;;  %vm413_vm15 = vcmask (!%p203_p10), 91184  }
  0x16   : > { %s2300_s29 = scalar_select %p242_p11, %s2196_s18, 1  ;;  %1935 = vmatpush1.bf16.msra.mxu0 %v1934_v41  ;;  %1945 = vmatpush1.bf16.msra.mxu1 %v1934_v41 }
  0x17   : > { %1937 = vmatprep.subr.bf16.mxu0 %v1936_v44  ;;  %1942 = vmatprep.subr.bf16.mxu1 %v1936_v44 }
  0x18   : > { %s1949_s30 = smul.u32 144, %s2300_s29 }
  0x19   : > { %s1950_s13 = smul.u32 72, %s2300_s29  ;;  %s2212_s29 = smov 42  }
  0x1a   : > { %s2306_s7 = scalar_lea.vmem %s3107_s0, %s1949_s30  ;;  %1939 = vmatpush1.bf16.msra.mxu0 %v1938_v47  ;;  %1946 = vmatpush1.bf16.msra.mxu1 %v1938_v47 }
  0x1b   : > { %v2309_v0 = vld [vmem:[%s2306_s7 + $0x52] sm:$0xff]  ;;  %v298_v1 = vld [vmem:[%s2306_s7 + $0x2] sm:$0xff]  ;;  %v2317_v3 = vld [vmem:[%s2306_s7 + $0x4a] sm:$0xff]  ;;  %s2432_s22 = scalar_lea.vmem %s3108_s1, %s1950_s13  ;;  %s2211_s13 = smov 36   ;;  %1869 = vmatprep.subr.msk.mxu0 %vm1314_vm1, %v1246_v50  ;;  %1943 = vmatprep.subr.msk.mxu1 %vm1314_vm1, %v1246_v50 }
  0x1c   : > { %354 = vrot.lane.b32.xlu1 %v2309_v0, %s3114_s8  ;;  %334 = vrot.lane.b32.xlu0 %v298_v1, %s3114_s8  ;;  %v415_v2 = vld [vmem:[%s2306_s7 + $0x4] sm:$0xff]  ;;  %v2324_v6 = vld [vmem:[%s2306_s7 + $0x70] sm:$0xff] }
  0x1d   : > { %v2320_v4 = vld [vmem:[%s2306_s7 + $0x68] sm:$0xff]  ;;  %v531_v5 = vld [vmem:[%s2306_s7 + $0x20] sm:$0xff]  ;;  %294 = vst.msk [vmem:[#allocation2 + $0x70] sm:$0xff] %vm279_vm0, %v2324_v6  ;;  %v2335_v7 = vld [vmem:[%s2306_s7 + $0x54] sm:$0xff] }
  0x1e   : > { %293 = vst.msk [vmem:[#allocation2 + $0x68] sm:$0xff] %vm279_vm0, %v2320_v4  ;;  %284 = vst.msk [vmem:[#allocation2 + $0x20] sm:$0xff] %vm279_vm0, %v531_v5  ;;  %v2338_v8 = vld [vmem:[%s2306_s7 + $0x4c] sm:$0xff]  ;;  %v2341_v9 = vld [vmem:[%s2306_s7 + $0x78] sm:$0xff]  ;;  %1870 = vmatpush1.msk.msra.mxu0 %vm1314_vm1, %v1245_v51  ;;  %1947 = vmatpush1.msk.msra.mxu1 %vm1314_vm1, %v1245_v51  ;;  %vm523_vm1 = vcmask 142432  }
  0x1f   : > { %v2344_v10 = vld [vmem:[%s2306_s7 + $0x28] sm:$0xff]  ;;  %295 = vst.msk [vmem:[#allocation2 + $0x78] sm:$0xff] %vm279_vm0, %v2341_v9  ;;  %v2364_v13 = vld [vmem:[%s2306_s7 + $0x80] sm:$0xff]  ;;  %v2375_v14 = vld [vmem:[%s2306_s7 + $0x50] sm:$0xff] }
  0x20   : > { %451 = vrot.lane.b32.xlu1 %v415_v2, %s2207_s9  ;;  %352 = vrot.lane.b32.xlu0 %v2317_v3, %s3114_s8  ;;  %285 = vst.msk [vmem:[#allocation2 + $0x28] sm:$0xff] %vm279_vm0, %v2344_v10  ;;  %v2358_v11 = vld [vmem:[%s2306_s7 + $0x48] sm:$0xff]  ;;  %296 = vst.msk [vmem:[#allocation2 + $0x80] sm:$0xff] %vm279_vm0, %v2364_v13  ;;  %v261_v15 = vld [vmem:[%s2306_s7] sm:$0xff] }
  0x21   : > { %v2361_v12 = vld [vmem:[%s2306_s7 + $0x22] sm:$0xff]  ;;  %289 = vst.msk [vmem:[#allocation2 + $0x48] sm:$0xff] %vm279_vm0, %v2358_v11  ;;  %v2379_v16 = vld [vmem:[%s2306_s7 + $0x72] sm:$0xff]  ;;  %v2382_v17 = vld [vmem:[%s2306_s7 + $0x6a] sm:$0xff] }
  0x22   : > { %290 = vst.msk [vmem:[#allocation2 + $0x50] sm:$0xff] %vm279_vm0, %v2375_v14  ;;  %280 = vst.msk [vmem:[#allocation2] sm:$0xff] %vm279_vm0, %v261_v15  ;;  %v2388_v18 = vld [vmem:[%s2306_s7 + $0x58] sm:$0xff]  ;;  %v262_v19 = vld [vmem:[%s2306_s7 + $0x8] sm:$0xff] }
  0x23   : > { %291 = vst.msk [vmem:[#allocation2 + $0x58] sm:$0xff] %vm279_vm0, %v2388_v18  ;;  %281 = vst.msk [vmem:[#allocation2 + $0x8] sm:$0xff] %vm279_vm0, %v262_v19  ;;  %v2399_v20 = vld [vmem:[%s2306_s7 + $0x5a] sm:$0xff]  ;;  %v299_v21 = vld [vmem:[%s2306_s7 + $0xa] sm:$0xff] }
  0x24   : > { %471 = vrot.lane.b32.xlu1 %v2335_v7, %s2207_s9  ;;  %469 = vrot.lane.b32.xlu0 %v2338_v8, %s2207_s9  ;;  %v2406_v22 = vld [vmem:[%s2306_s7 + $0x6c] sm:$0xff]  ;;  %v2409_v23 = vld [vmem:[%s2306_s7 + $0x24] sm:$0xff] }
  0x25   : > { %v416_v24 = vld [vmem:[%s2306_s7 + $0xc] sm:$0xff]  ;;  %v2417_v25 = vld [vmem:[%s2306_s7 + $0x74] sm:$0xff]  ;;  %v2424_v26 = vld [vmem:[%s2306_s7 + $0x40] sm:$0xff] }
  0x26   : > { %v2427_v27 = vld [vmem:[%s2306_s7 + $0x5c] sm:$0xff]  ;;  %v2454_v35 = vld [vmem:[%s2306_s7 + $0x88] sm:$0xff]  ;;  %v263_v55 = vld [vmem:[%s2306_s7 + $0x10] sm:$0xff] }
  0x27   : > { %v2451_v34 = vld [vmem:[%s2432_s22] sm:$0xff]  ;;  %v991_v48 = vld [vmem:[%s2306_s7 + $0x8a] sm:$0x3f]  ;;  %282 = vst.msk [vmem:[#allocation2 + $0x10] sm:$0xff] %vm279_vm0, %v263_v55  ;;  %v300_v60 = vld [vmem:[%s2306_s7 + $0x12] sm:$0xff] }
  0x28   : > { %577 = vrot.lane.b32.xlu1 %v2320_v4, %s2208_s10  ;;  %559 = vrot.lane.b32.xlu0 %v531_v5, %s2208_s10  ;;  %v2490_v49 = vld [vmem:[%s2306_s7 + $0x42] sm:$0xff]  ;;  %v2502_v52 = vld [vmem:[%s2306_s7 + $0x2a] sm:$0xff] }
  0x29   : > { %v2506_v54 = vld [vmem:[%s2306_s7 + $0x60] sm:$0xff]  ;;  %v1108_v58 = vld [vmem:[%s2306_s7 + $0x8c] sm:$0xf]  ;;  %v417_v1 = vld [vmem:[%s2306_s7 + $0x14] sm:$0xff] }
  0x2a   : > { %292 = vst.msk [vmem:[#allocation2 + $0x60] sm:$0xff] %vm279_vm0, %v2506_v54  ;;  %v2518_v56 = vld [vmem:[%s2306_s7 + $0x44] sm:$0xff]  ;;  %v2521_v57 = vld [vmem:[%s2306_s7 + $0x7a] sm:$0xff]  ;;  %v2542_v62 = vld [vmem:[%s2306_s7 + $0x2c] sm:$0xff] }
  0x2b   : > { %v2532_v59 = vld [vmem:[%s2306_s7 + $0x62] sm:$0xff]  ;;  %v533_v5 = vld [vmem:[%s2306_s7 + $0x30] sm:$0xff]  ;;  %v534_v31 = vld [vmem:[%s2306_s7 + $0x38] sm:$0xff] }
  0x2c   : > { %668 = vrot.lane.b32.xlu1 %v2361_v12, %s2209_s11  ;;  %579 = vrot.lane.b32.xlu0 %v2324_v6, %s2208_s10  ;;  %v2539_v61 = vld [vmem:[%s2306_s7 + $0x7c] sm:$0xff]  ;;  %v2549_v63 = vld [vmem:[%s2306_s7 + $0x64] sm:$0xff] }
  0x2d   : > { %v2556_v2 = vld [vmem:[%s2432_s22 + $0x8] sm:$0xff]  ;;  %v2576_v19 = vld [vmem:[%s2306_s7 + $0x32] sm:$0xff]  ;;  %v418_v28 = vld [vmem:[%s2306_s7 + $0x1c] sm:$0xff] }
  0x2e   : > { %v2573_v15 = vld [vmem:[%s2306_s7 + $0x82] sm:$0xff]  ;;  %v2609_v30 = vld [vmem:[%s2432_s22 + $0x10] sm:$0xff]  ;;  %v2628_v38 = vld [vmem:[%s2306_s7 + $0x3a] sm:$0xff] }
  0x2f   : > { %v2599_v29 = vld [vmem:[%s2306_s7 + $0x84] sm:$0xff]  ;;  %v770_v47 = vld [vmem:[%s2306_s7 + $0x8c] sm:$0xf] }
  0x30   : > { %688 = vrot.lane.b32.xlu1 %v2379_v16, %s2209_s11  ;;  %686 = vrot.lane.b32.xlu0 %v2382_v17, %s2209_s11  ;;  %v653_v40 = vld [vmem:[%s2306_s7 + $0x8a] sm:$0x3f] }
  0x34   : > { %356 = vrot.lane.b32.xlu1 %v2399_v20, %s3114_s8  ;;  %336 = vrot.lane.b32.xlu0 %v299_v21, %s3114_s8  ;;  %s3118_s8 = smov 6   ;;  %v301_v21 = vld [vmem:[%s2306_s7 + $0x1a] sm:$0xff] }
  0x38   : > { %803 = vrot.lane.b32.xlu1 %v2406_v22, %s3112_s12  ;;  %785 = vrot.lane.b32.xlu0 %v2409_v23, %s3112_s12 }
  0x3c   : > { %453 = vrot.lane.b32.xlu1 %v416_v24, %s2207_s9  ;;  %805 = vrot.lane.b32.xlu0 %v2417_v25, %s3112_s12  ;;  %s3119_s12 = smov 30   ;;  %v2591_v24 = vld [vmem:[%s2306_s7 + $0x34] sm:$0xff] }
  0x40   : > { %893 = vrot.lane.b32.xlu1 %v2424_v26, %s2211_s13  ;;  %473 = vrot.lane.b32.xlu0 %v2427_v27, %s2207_s9 }
  0x44   : > { %950 = vrot.lane.b32.xlu1 %v2451_v34, %s2211_s13  ;;  %911 = vrot.lane.b32.xlu0 %v2454_v35, %s2211_s13 }
  0x48   : > { %581 = vrot.lane.b32.xlu1 %v2341_v9, %s2208_s10  ;;  %561 = vrot.lane.b32.xlu0 %v2344_v10, %s2208_s10  ;;  %v264_v10 = vld [vmem:[%s2306_s7 + $0x18] sm:$0xff] }
  0x49   : > { %283 = vst.msk [vmem:[#allocation2 + $0x18] sm:$0xff] %vm279_vm0, %v264_v10 }
  0x4c   : > { %1020 = vrot.lane.b32.xlu1 %v991_v48, %s2212_s29  ;;  %1002 = vrot.lane.b32.xlu0 %v2490_v49, %s2212_s29  ;;  %v2656_v48 = vld [vmem:[%s2306_s7 + $0x3c] sm:$0xff] }
  0x50   : > { %670 = vrot.lane.b32.xlu1 %v2502_v52, %s2209_s11  ;;  %1062 = vrot.lane.b32.xlu0 %v2451_v34, %s2212_s29 }
  0x54   : > { %1119 = vrot.lane.b32.xlu1 %v2518_v56, %s2214_s21  ;;  %690 = vrot.lane.b32.xlu0 %v2521_v57, %s2209_s11 }
  0x58   : > { %1179 = vrot.lane.b32.xlu1 %v2451_v34, %s2214_s21  ;;  %1137 = vrot.lane.b32.xlu0 %v1108_v58, %s2214_s21 }
  0x5c   : > { %358 = vrot.lane.b32.xlu1 %v2532_v59, %s3118_s8  ;;  %338 = vrot.lane.b32.xlu0 %v300_v60, %s3118_s8 }
  0x60   : > { %807 = vrot.lane.b32.xlu1 %v2539_v61, %s3119_s12  ;;  %787 = vrot.lane.b32.xlu0 %v2542_v62, %s3119_s12 }
  0x64   : > { %475 = vrot.lane.b32.xlu1 %v2549_v63, %s2207_s9  ;;  %455 = vrot.lane.b32.xlu0 %v417_v1, %s2207_s9  ;;  %v2676_v1 = vld [vmem:[%s2432_s22 + $0x18] sm:$0xff] }
  0x68   : > { %952 = vrot.lane.b32.xlu1 %v2556_v2, %s2211_s13  ;;  %895 = vrot.lane.b32.xlu0 %v2358_v11, %s2211_s13 }
  0x6c   : > { %583 = vrot.lane.b32.xlu1 %v2364_v13, %s2208_s10  ;;  %563 = vrot.lane.b32.xlu0 %v533_v5, %s2208_s10 }
  0x70   : > { %1064 = vrot.lane.b32.xlu1 %v2556_v2, %s2212_s29  ;;  %1004 = vrot.lane.b32.xlu0 %v2317_v3, %s2212_s29 }
  0x74   : > { %692 = vrot.lane.b32.xlu1 %v2573_v15, %s2209_s11  ;;  %672 = vrot.lane.b32.xlu0 %v2576_v19, %s2209_s11 }
  0x78   : > { %1181 = vrot.lane.b32.xlu1 %v2556_v2, %s2214_s21  ;;  %1121 = vrot.lane.b32.xlu0 %v2338_v8, %s2214_s21 }
  0x7c   : > { %360 = vrot.lane.b32.xlu1 %v2382_v17, %s3118_s8  ;;  %340 = vrot.lane.b32.xlu0 %v301_v21, %s3118_s8 }
  0x80   : > { %789 = vrot.lane.b32.xlu1 %v2591_v24, %s3119_s12  ;;  %362 = vrot.lane.b32.xlu0 %v2379_v16, %s3118_s8 }
  0x84   : > { %457 = vrot.lane.b32.xlu1 %v418_v28, %s2207_s9  ;;  %809 = vrot.lane.b32.xlu0 %v2599_v29, %s3119_s12 }
  0x88   : > { %479 = vrot.lane.b32.xlu1 %v2417_v25, %s2207_s9  ;;  %477 = vrot.lane.b32.xlu0 %v2406_v22, %s2207_s9 }
  0x8c   : > { %954 = vrot.lane.b32.xlu1 %v2609_v30, %s2211_s13  ;;  %897 = vrot.lane.b32.xlu0 %v2375_v14, %s2211_s13 }
  0x8e   : > { %v355_v32 = vpop.permute.xlu1 %354  ;;  %v335_v33 = vpop.permute.xlu0 %334 }
  0x8f   : > { %399 = vst.msk [vmem:[#allocation2 + $0x50] sm:$0xff] %vm388_vm2, %v355_v32  ;;  %389 = vst.msk [vmem:[#allocation2] sm:$0xff] %vm388_vm2, %v335_v33 }
  0x90   : > { %585 = vrot.lane.b32.xlu1 %v2454_v35, %s2208_s10  ;;  %565 = vrot.lane.b32.xlu0 %v534_v31, %s2208_s10 }
  0x92   : > { %v452_v36 = vpop.permute.xlu1 %451  ;;  %v353_v37 = vpop.permute.xlu0 %352 }
  0x93   : > { %506 = vst.msk [vmem:[#allocation2] sm:$0xff] %vm505_vm3, %v452_v36 }
  0x94   : > { %398 = vst.msk [vmem:[#allocation2 + $0x48] sm:$0xff] %vm388_vm2, %v353_v37  ;;  %1006 = vrot.lane.b32.xlu1 %v2309_v0, %s2212_s29  ;;  %624 = vrot.lane.b32.xlu0 %v2451_v34, %s2208_s10 }
  0x96   : > { %v472_v39 = vpop.permute.xlu1 %471  ;;  %v470_v35 = vpop.permute.xlu0 %469 }
  0x97   : > { %516 = vst.msk [vmem:[#allocation2 + $0x50] sm:$0xff] %vm505_vm3, %v472_v39  ;;  %515 = vst.msk [vmem:[#allocation2 + $0x48] sm:$0xff] %vm505_vm3, %v470_v35 }
  0x98   : > { %674 = vrot.lane.b32.xlu1 %v2628_v38, %s2209_s11  ;;  %1066 = vrot.lane.b32.xlu0 %v2609_v30, %s2212_s29 }
  0x9a   : > { %v578_v41 = vpop.permute.xlu1 %577  ;;  %v560_v42 = vpop.permute.xlu0 %559 }
  0x9b   : > { %611 = vst.msk [vmem:[#allocation2 + $0x48] sm:$0xff] %vm601_vm4, %v578_v41  ;;  %602 = vst.msk [vmem:[#allocation2] sm:$0xff] %vm601_vm4, %v560_v42 }
  0x9c   : > { %736 = vrot.lane.b32.xlu1 %v2451_v34, %s2209_s11  ;;  %694 = vrot.lane.b32.xlu0 %v653_v40, %s2209_s11 }
  0x9e   : > { %v669_v43 = vpop.permute.xlu1 %668  ;;  %v580_v44 = vpop.permute.xlu0 %579 }
  0x9f   : > { %711 = vst.msk [vmem:[#allocation2] sm:$0xff] %vm710_vm5, %v669_v43 }
  0xa0   : > { %612 = vst.msk [vmem:[#allocation2 + $0x50] sm:$0xff] %vm601_vm4, %v580_v44  ;;  %1183 = vrot.lane.b32.xlu1 %v2609_v30, %s2214_s21  ;;  %1123 = vrot.lane.b32.xlu0 %v2335_v7, %s2214_s21  ;;  %v267_v44 = vld [vmem:[%s2306_s7 + $0x30] sm:$0xff] }
  0xa1   : > { %286 = vst.msk [vmem:[#allocation2 + $0x30] sm:$0xff] %vm279_vm0, %v267_v44 }
  0xa2   : > { %v689_v45 = vpop.permute.xlu1 %688  ;;  %v687_v46 = vpop.permute.xlu0 %686 }
  0xa3   : > { %721 = vst.msk [vmem:[#allocation2 + $0x50] sm:$0xff] %vm710_vm5, %v689_v45  ;;  %720 = vst.msk [vmem:[#allocation2 + $0x48] sm:$0xff] %vm710_vm5, %v687_v46 }
  0xa4   : > { %364 = vrot.lane.b32.xlu1 %v2521_v57, %s3118_s8  ;;  %342 = vrot.lane.b32.xlu0 %v2361_v12, %s3118_s8 }
  0xa6   : > { %v357_v50 = vpop.permute.xlu1 %356  ;;  %v337_v51 = vpop.permute.xlu0 %336 }
  0xa7   : > { %400 = vst.msk [vmem:[#allocation2 + $0x58] sm:$0xff] %vm388_vm2, %v357_v50  ;;  %390 = vst.msk [vmem:[#allocation2 + $0x8] sm:$0xff] %vm388_vm2, %v337_v51 }
  0xa8   : > { %811 = vrot.lane.b32.xlu1 %v770_v47, %s3119_s12  ;;  %791 = vrot.lane.b32.xlu0 %v2656_v48, %s3119_s12 }
  0xaa   : > { %v804_v55 = vpop.permute.xlu1 %803  ;;  %v786_v58 = vpop.permute.xlu0 %785 }
  0xab   : > { %837 = vst.msk [vmem:[#allocation2 + $0x48] sm:$0xff] %vm827_vm6, %v804_v55  ;;  %828 = vst.msk [vmem:[#allocation2] sm:$0xff] %vm827_vm6, %v786_v58 }
  0xac   : > { %459 = vrot.lane.b32.xlu1 %v2409_v23, %s2207_s9  ;;  %853 = vrot.lane.b32.xlu0 %v2451_v34, %s3119_s12 }
  0xae   : > { %v454_v12 = vpop.permute.xlu1 %453  ;;  %v806_v60 = vpop.permute.xlu0 %805 }
  0xaf   : > { %507 = vst.msk [vmem:[#allocation2 + $0x8] sm:$0xff] %vm505_vm3, %v454_v12 }
  0xb0   : > { %838 = vst.msk [vmem:[#allocation2 + $0x50] sm:$0xff] %vm827_vm6, %v806_v60  ;;  %899 = vrot.lane.b32.xlu1 %v2388_v18, %s2211_s13  ;;  %481 = vrot.lane.b32.xlu0 %v2539_v61, %s2207_s9  ;;  %v315_v60 = vld [vmem:[%s2306_s7 + $0x8a] sm:$0x3f] }
  0xb2   : > { %v894_v5 = vpop.permute.xlu1 %893  ;;  %v474_v23 = vpop.permute.xlu0 %473 }
  0xb3   : > { %924 = vst.msk [vmem:[#allocation2] sm:$0xff] %vm923_vm7, %v894_v5 }
  0xb4   : > { %517 = vst.msk [vmem:[#allocation2 + $0x58] sm:$0xff] %vm505_vm3, %v474_v23  ;;  %567 = vrot.lane.b32.xlu1 %v2424_v26, %s2208_s10  ;;  %956 = vrot.lane.b32.xlu0 %v2676_v1, %s2211_s13 }
  0xb6   : > { %v951_v34 = vpop.permute.xlu1 %950  ;;  %v912_v10 = vpop.permute.xlu0 %911 }
  0xb7   : > { %974 = vst.msk [vmem:[#allocation2 + $0x50] sm:$0xff] %vm923_vm7, %v951_v34  ;;  %933 = vst.msk [vmem:[#allocation2 + $0x48] sm:$0xff] %vm923_vm7, %v912_v10 }
  0xb8   : > { %1008 = vrot.lane.b32.xlu1 %v2399_v20, %s2212_s29  ;;  %626 = vrot.lane.b32.xlu0 %v2556_v2, %s2208_s10 }
  0xba   : > { %v582_v21 = vpop.permute.xlu1 %581  ;;  %v562_v28 = vpop.permute.xlu0 %561 }
  0xbb   : > { %613 = vst.msk [vmem:[#allocation2 + $0x58] sm:$0xff] %vm601_vm4, %v582_v21  ;;  %603 = vst.msk [vmem:[#allocation2 + $0x8] sm:$0xff] %vm601_vm4, %v562_v28 }
  0xbc   : > { %676 = vrot.lane.b32.xlu1 %v2490_v49, %s2209_s11  ;;  %1068 = vrot.lane.b32.xlu0 %v2676_v1, %s2212_s29 }
  0xbe   : > { %v1021_v26 = vpop.permute.xlu1 %1020  ;;  %v1003_v31 = vpop.permute.xlu0 %1002 }
  0xbf   : > { %1043 = vst.msk [vmem:[#allocation2 + $0x48] sm:$0x3f] %vm1042_vm8, %v1021_v26  ;;  %v525_v26 = vld [vmem:[%s2432_s22] sm:$0xf]  ;;  %vm755_vm8 = vcmask 238784  }
  0xc0   : > { %1033 = vst.msk [vmem:[#allocation2] sm:$0xff] %vm1032_vm9, %v1003_v31  ;;  %1125 = vrot.lane.b32.xlu1 %v2427_v27, %s2214_s21  ;;  %738 = vrot.lane.b32.xlu0 %v2556_v2, %s2209_s11 }
  0xc2   : > { %v671_v32 = vpop.permute.xlu1 %670  ;;  %v1063_v33 = vpop.permute.xlu0 %1062 }
  0xc3   : > { %712 = vst.msk [vmem:[#allocation2 + $0x8] sm:$0xff] %vm710_vm5, %v671_v32 }
  0xc4   : > { %1089 = vst.msk [vmem:[#allocation2 + $0x4e] sm:$0xff] %vm1032_vm9, %v1063_v33  ;;  %344 = vrot.lane.b32.xlu1 %v2502_v52, %s3118_s8  ;;  %1185 = vrot.lane.b32.xlu0 %v2676_v1, %s2214_s21 }
  0xc6   : > { %v1120_v36 = vpop.permute.xlu1 %1119  ;;  %v691_v37 = vpop.permute.xlu0 %690 }
  0xc7   : > { %1150 = vst.msk [vmem:[#allocation2] sm:$0xff] %vm1149_vm10, %v1120_v36 }
  0xc8   : > { %722 = vst.msk [vmem:[#allocation2 + $0x58] sm:$0xff] %vm710_vm5, %v691_v37  ;;  %793 = vrot.lane.b32.xlu1 %v2518_v56, %s3119_s12  ;;  %366 = vrot.lane.b32.xlu0 %v2573_v15, %s3118_s8  ;;  %v268_v37 = vld [vmem:[%s2306_s7 + $0x38] sm:$0xff] }
  0xc9   : > { %287 = vst.msk [vmem:[#allocation2 + $0x38] sm:$0xff] %vm279_vm0, %v268_v37 }
  0xca   : > { %v1180_v39 = vpop.permute.xlu1 %1179  ;;  %v1138_v52 = vpop.permute.xlu0 %1137 }
  0xcb   : > { %1206 = vst.msk [vmem:[#allocation2 + $0x4c] sm:$0xff] %vm1149_vm10, %v1180_v39 }
  0xcc   : > { %1160 = vst.msk [vmem:[#allocation2 + $0x48] sm:$0xf] %vm1159_vm11, %v1138_v52  ;;  %461 = vrot.lane.b32.xlu1 %v2542_v62, %s2207_s9  ;;  %855 = vrot.lane.b32.xlu0 %v2556_v2, %s3119_s12  ;;  %v938_v62 = vld [vmem:[%s2432_s22 + $0x20] sm:$0xff] }
  0xce   : > { %v359_v35 = vpop.permute.xlu1 %358  ;;  %v339_v40 = vpop.permute.xlu0 %338  ;;  %v1215_v41 = vld [vmem:[#allocation2] sm:$0xff] }
  0xcf   : > { %401 = vst.msk [vmem:[#allocation2 + $0x60] sm:$0xff] %vm388_vm2, %v359_v35  ;;  %391 = vst.msk [vmem:[#allocation2 + $0x10] sm:$0xff] %vm388_vm2, %v339_v40  ;;  %1871 = vmatmul.mubr.msk.f32.vlgmr.msra.gmra.mrb[0].mxu0 %vm1259_vm12, %v1215_v41 }
  0xd0   : > { %901 = vrot.lane.b32.xlu1 %v2506_v54, %s2211_s13  ;;  %483 = vrot.lane.b32.xlu0 %v2599_v29, %s2207_s9 }
  0xd1   : > { %1391 = vmatprep.mubr.f32.mxu0 %v2213_v53 }
  0xd2   : > { %v808_v2 = vpop.permute.xlu1 %807  ;;  %v788_v42 = vpop.permute.xlu0 %787 }
  0xd3   : > { %v1224_v43 = vld [vmem:[#allocation2 + $0x48] sm:$0xff]  ;;  %839 = vst.msk [vmem:[#allocation2 + $0x58] sm:$0xff] %vm827_vm6, %v808_v2  ;;  %829 = vst.msk [vmem:[#allocation2 + $0x8] sm:$0xff] %vm827_vm6, %v788_v42 }
  0xd4   : > { %1880 = vmatmul.mubr.msk.f32.vlgmr.msra.gmra.mrb[0].mxu1 %vm1259_vm12, %v1224_v43  ;;  %569 = vrot.lane.b32.xlu1 %v2358_v11, %s2208_s10  ;;  %v278_v11 = vld [vmem:[%s2306_s7 + $0x88] sm:$0xff] }
  0xd5   : > { %958 = vrot.lane.b32.xlu0 %v938_v62, %s2211_s13  ;;  %1445 = vmatprep.mubr.f32.mxu1 %v2213_v53  ;;  %297 = vst.msk [vmem:[#allocation2 + $0x88] sm:$0xff] %vm279_vm0, %v278_v11 }
  0xd6   : > { %v476_v45 = vpop.permute.xlu1 %475  ;;  %v456_v46 = vpop.permute.xlu0 %455 }
  0xd7   : > { %518 = vst.msk [vmem:[#allocation2 + $0x60] sm:$0xff] %vm505_vm3, %v476_v45  ;;  %508 = vst.msk [vmem:[#allocation2 + $0x10] sm:$0xff] %vm505_vm3, %v456_v46 }
  0xd8   : > { %1010 = vrot.lane.b32.xlu1 %v2532_v59, %s2212_s29 }
  0xd9   : > { %628 = vrot.lane.b32.xlu0 %v2609_v30, %s2208_s10 }
  0xda   : > { %v953_v47 = vpop.permute.xlu1 %952  ;;  %v896_v50 = vpop.permute.xlu0 %895 }
  0xdb   : > { %975 = vst.msk [vmem:[#allocation2 + $0x58] sm:$0xff] %vm923_vm7, %v953_v47  ;;  %925 = vst.msk [vmem:[#allocation2 + $0x8] sm:$0xff] %vm923_vm7, %v896_v50 }
  0xdc   : > { %678 = vrot.lane.b32.xlu1 %v2317_v3, %s2209_s11  ;;  %v408_v3 = vld [vmem:[%s2432_s22] sm:$0x3] }
  0xdd   : > { %1070 = vrot.lane.b32.xlu0 %v938_v62, %s2212_s29 }
  0xde   : > { %v584_v51 = vpop.permute.xlu1 %583  ;;  %v564_v55 = vpop.permute.xlu0 %563 }
  0xdf   : > { %614 = vst.msk [vmem:[#allocation2 + $0x60] sm:$0xff] %vm601_vm4, %v584_v51  ;;  %604 = vst.msk [vmem:[#allocation2 + $0x10] sm:$0xff] %vm601_vm4, %v564_v55 }
  0xe0   : > { %1127 = vrot.lane.b32.xlu1 %v2549_v63, %s2214_s21 }
  0xe1   : > { %740 = vrot.lane.b32.xlu0 %v2609_v30, %s2209_s11 }
  0xe2   : > { %v1065_v58 = vpop.permute.xlu1 %1064  ;;  %v1005_v12 = vpop.permute.xlu0 %1004 }
  0xe3   : > { %1090 = vst.msk [vmem:[#allocation2 + $0x56] sm:$0xff] %vm1032_vm9, %v1065_v58  ;;  %1034 = vst.msk [vmem:[#allocation2 + $0x8] sm:$0xff] %vm1032_vm9, %v1005_v12 }
  0xe4   : > { %346 = vrot.lane.b32.xlu1 %v2576_v19, %s3118_s8  ;;  %v432_v19 = vld [vmem:[%s2306_s7 + $0x8c] sm:$0xf] }
  0xe5   : > { %1187 = vrot.lane.b32.xlu0 %v938_v62, %s2214_s21 }
  0xe6   : > { %v693_v5 = vpop.permute.xlu1 %692  ;;  %v673_v23 = vpop.permute.xlu0 %672 }
  0xe7   : > { %723 = vst.msk [vmem:[#allocation2 + $0x60] sm:$0xff] %vm710_vm5, %v693_v5  ;;  %713 = vst.msk [vmem:[#allocation2 + $0x10] sm:$0xff] %vm710_vm5, %v673_v23 }
  0xe8   : > { %410 = vrot.lane.b32.xlu1 %v408_v3, %s3118_s8 }
  0xe9   : > { %368 = vrot.lane.b32.xlu0 %v315_v60, %s3118_s8 }
  0xea   : > { %v1182_v34 = vpop.permute.xlu1 %1181  ;;  %v1122_v10 = vpop.permute.xlu0 %1121 }
  0xeb   : > { %1207 = vst.msk [vmem:[#allocation2 + $0x54] sm:$0xff] %vm1149_vm10, %v1182_v34  ;;  %1151 = vst.msk [vmem:[#allocation2 + $0x8] sm:$0xff] %vm1149_vm10, %v1122_v10 }
  0xec   : > { %857 = vrot.lane.b32.xlu1 %v2609_v30, %s3119_s12 }
  0xed   : > { %795 = vrot.lane.b32.xlu0 %v2338_v8, %s3119_s12  ;;  %v939_v8 = vld [vmem:[%s2432_s22 + $0x28] sm:$0xff] }
  0xee   : > { %v361_v21 = vpop.permute.xlu1 %360  ;;  %v341_v28 = vpop.permute.xlu0 %340 }
  0xef   : > { %402 = vst.msk [vmem:[#allocation2 + $0x68] sm:$0xff] %vm388_vm2, %v361_v21  ;;  %392 = vst.msk [vmem:[#allocation2 + $0x18] sm:$0xff] %vm388_vm2, %v341_v28 }
  0xf0   : > { %485 = vrot.lane.b32.xlu1 %v432_v19, %s2207_s9 }
  0xf1   : > { %463 = vrot.lane.b32.xlu0 %v2591_v24, %s2207_s9 }
  0xf2   : > { %v790_v31 = vpop.permute.xlu1 %789  ;;  %v363_v32 = vpop.permute.xlu0 %362  ;;  %v1216_v30 = vld [vmem:[#allocation2 + $0x8] sm:$0xff]  ;;  %v1225_v33 = vld [vmem:[#allocation2 + $0x50] sm:$0xff] }
  0xf3   : > { %830 = vst.msk [vmem:[#allocation2 + $0x10] sm:$0xff] %vm827_vm6, %v790_v31  ;;  %1872 = vmatmul.mubr.msk.f32.gmra.mrb[2].mxu0 %vm1259_vm12, %v1216_v30  ;;  %1881 = vmatmul.mubr.msk.f32.gmra.mrb[2].mxu1 %vm1259_vm12, %v1225_v33 }
  0xf4   : > { %403 = vst.msk [vmem:[#allocation2 + $0x70] sm:$0xff] %vm388_vm2, %v363_v32  ;;  %903 = vrot.lane.b32.xlu1 %v2320_v4, %s2211_s13  ;;  %1397 = vmatprep.mubr.f32.mxu0 %v2213_v53 }
  0xf5   : > { %527 = vrot.lane.b32.xlu0 %v525_v26, %s2207_s9  ;;  %1451 = vmatprep.mubr.f32.mxu1 %v2213_v53 }
  0xf6   : > { %v458_v24 = vpop.permute.xlu1 %457  ;;  %v810_v36 = vpop.permute.xlu0 %809 }
  0xf7   : > { %509 = vst.msk [vmem:[#allocation2 + $0x18] sm:$0xff] %vm505_vm3, %v458_v24 }
  0xf8   : > { %840 = vst.msk [vmem:[#allocation2 + $0x60] sm:$0xff] %vm827_vm6, %v810_v36  ;;  %571 = vrot.lane.b32.xlu1 %v2375_v14, %s2208_s10 }
  0xf9   : > { %960 = vrot.lane.b32.xlu0 %v939_v8, %s2211_s13 }
  0xfa   : > { %v480_v4 = vpop.permute.xlu1 %479  ;;  %v478_v39 = vpop.permute.xlu0 %477 }
  0xfb   : > { %520 = vst.msk [vmem:[#allocation2 + $0x70] sm:$0xff] %vm505_vm3, %v480_v4  ;;  %519 = vst.msk [vmem:[#allocation2 + $0x68] sm:$0xff] %vm505_vm3, %v478_v39 }
  0xfc   : > { %1012 = vrot.lane.b32.xlu1 %v2382_v17, %s2212_s29 }
  0xfd   : > { %630 = vrot.lane.b32.xlu0 %v2676_v1, %s2208_s10 }
  0xfe   : > { %v955_v52 = vpop.permute.xlu1 %954  ;;  %v898_v35 = vpop.permute.xlu0 %897 }
  0xff   : > { %976 = vst.msk [vmem:[#allocation2 + $0x60] sm:$0xff] %vm923_vm7, %v955_v52  ;;  %926 = vst.msk [vmem:[#allocation2 + $0x10] sm:$0xff] %vm923_vm7, %v898_v35 }
 0x100   : > { %680 = vrot.lane.b32.xlu1 %v2309_v0, %s2209_s11 }
 0x101   : > { %1072 = vrot.lane.b32.xlu0 %v939_v8, %s2212_s29 }
 0x102   : > { %v586_v14 = vpop.permute.xlu1 %585  ;;  %v566_v40 = vpop.permute.xlu0 %565 }
 0x103   : > { %615 = vst.msk [vmem:[#allocation2 + $0x68] sm:$0xff] %vm601_vm4, %v586_v14  ;;  %605 = vst.msk [vmem:[#allocation2 + $0x18] sm:$0xff] %vm601_vm4, %v566_v40 }
 0x104   : > { %1129 = vrot.lane.b32.xlu1 %v2406_v22, %s2214_s21 }
 0x105   : > { %742 = vrot.lane.b32.xlu0 %v2676_v1, %s2209_s11 }
 0x106   : > { %v1007_v17 = vpop.permute.xlu1 %1006  ;;  %v625_v41 = vpop.permute.xlu0 %624 }
 0x107   : > { %1035 = vst.msk [vmem:[#allocation2 + $0x10] sm:$0xff] %vm1032_vm9, %v1007_v17 }
 0x108   : > { %636 = vst.msk [vmem:[#allocation2 + $0x70] sm:$0xff] %vm601_vm4, %v625_v41  ;;  %348 = vrot.lane.b32.xlu1 %v2628_v38, %s3118_s8  ;;  %v940_v38 = vld [vmem:[%s2432_s22 + $0x30] sm:$0xff] }
 0x109   : > { %1189 = vrot.lane.b32.xlu0 %v939_v8, %s2214_s21 }
 0x10a   : > { %v675_v0 = vpop.permute.xlu1 %674  ;;  %v1067_v62 = vpop.permute.xlu0 %1066 }
 0x10b   : > { %714 = vst.msk [vmem:[#allocation2 + $0x18] sm:$0xff] %vm710_vm5, %v675_v0 }
 0x10c   : > { %1091 = vst.msk [vmem:[#allocation2 + $0x5e] sm:$0xff] %vm1032_vm9, %v1067_v62  ;;  %859 = vrot.lane.b32.xlu1 %v2676_v1, %s3119_s12 }
 0x10d   : > { %797 = vrot.lane.b32.xlu0 %v2335_v7, %s3119_s12  ;;  %v269_v7 = vld [vmem:[%s2306_s7 + $0x40] sm:$0xff] }
 0x10e   : > { %v737_v22 = vpop.permute.xlu1 %736  ;;  %v695_v2 = vpop.permute.xlu0 %694  ;;  %288 = vst.msk [vmem:[#allocation2 + $0x40] sm:$0xff] %vm279_vm0, %v269_v7  ;;  %vm406_vm0 = vcmask 95280  }
 0x10f   : > { %751 = vst.msk [vmem:[#allocation2 + $0x6e] sm:$0xff] %vm710_vm5, %v737_v22 }
 0x110   : > { %725 = vst.msk [vmem:[#allocation2 + $0x68] sm:$0x3f] %vm724_vm13, %v695_v2  ;;  %905 = vrot.lane.b32.xlu1 %v2324_v6, %s2211_s13  ;;  %v730_v6 = vld [vmem:[%s2432_s22 + $0x20] sm:$0x3] }
 0x111   : > { %465 = vrot.lane.b32.xlu0 %v2656_v48, %s2207_s9 }
 0x112   : > { %v1184_v42 = vpop.permute.xlu1 %1183  ;;  %v1124_v1 = vpop.permute.xlu0 %1123 }
 0x113   : > { %1208 = vst.msk [vmem:[#allocation2 + $0x5c] sm:$0xff] %vm1149_vm10, %v1184_v42  ;;  %1152 = vst.msk [vmem:[#allocation2 + $0x10] sm:$0xff] %vm1149_vm10, %v1124_v1 }
 0x114   : > { %573 = vrot.lane.b32.xlu1 %v2388_v18, %s2208_s10 }
 0x115   : > { %962 = vrot.lane.b32.xlu0 %v940_v38, %s2211_s13 }
 0x116   : > { %v365_v43 = vpop.permute.xlu1 %364  ;;  %v343_v44 = vpop.permute.xlu0 %342 }
 0x117   : > { %404 = vst.msk [vmem:[#allocation2 + $0x78] sm:$0xff] %vm388_vm2, %v365_v43  ;;  %393 = vst.msk [vmem:[#allocation2 + $0x20] sm:$0xff] %vm388_vm2, %v343_v44 }
 0x118   : > { %1074 = vrot.lane.b32.xlu1 %v940_v38, %s2212_s29 }
 0x119   : > { %1014 = vrot.lane.b32.xlu0 %v2379_v16, %s2212_s29 }
 0x11a   : > { %v812_v48 = vpop.permute.xlu1 %811  ;;  %v792_v18 = vpop.permute.xlu0 %791  ;;  %v1217_v45 = vld [vmem:[#allocation2 + $0x10] sm:$0xff]  ;;  %v1226_v46 = vld [vmem:[#allocation2 + $0x58] sm:$0xff] }
 0x11b   : > { %842 = vst.msk [vmem:[#allocation2 + $0x68] sm:$0xf] %vm841_vm14, %v812_v48  ;;  %1873 = vmatmul.mubr.msk.f32.gmra.mrb[4].mxu0 %vm1259_vm12, %v1217_v45  ;;  %1882 = vmatmul.mubr.msk.f32.gmra.mrb[4].mxu1 %vm1259_vm12, %v1226_v46 }
 0x11c   : > { %831 = vst.msk [vmem:[#allocation2 + $0x18] sm:$0xff] %vm827_vm6, %v792_v18  ;;  %744 = vrot.lane.b32.xlu1 %v730_v6, %s2209_s11  ;;  %1403 = vmatprep.mubr.f32.mxu0 %v2213_v53 }
 0x11d   : > { %682 = vrot.lane.b32.xlu0 %v2399_v20, %s2209_s11  ;;  %1457 = vmatprep.mubr.f32.mxu1 %v2213_v53  ;;  %v847_v20 = vld [vmem:[%s2432_s22 + $0x20] sm:$0xf] }
 0x11e   : > { %v460_v16 = vpop.permute.xlu1 %459  ;;  %v854_v11 = vpop.permute.xlu0 %853 }
 0x11f   : > { %510 = vst.msk [vmem:[#allocation2 + $0x20] sm:$0xff] %vm505_vm3, %v460_v16 }
 0x120   : > { %868 = vst.msk [vmem:[#allocation2 + $0x6c] sm:$0xff] %vm827_vm6, %v854_v11  ;;  %1191 = vrot.lane.b32.xlu1 %v940_v38, %s2214_s21 }
 0x121   : > { %1131 = vrot.lane.b32.xlu0 %v2417_v25, %s2214_s21  ;;  %v941_v25 = vld [vmem:[%s2432_s22 + $0x38] sm:$0xff] }
 0x122   : > { %v900_v47 = vpop.permute.xlu1 %899  ;;  %v482_v50 = vpop.permute.xlu0 %481 }
 0x123   : > { %927 = vst.msk [vmem:[#allocation2 + $0x18] sm:$0xff] %vm923_vm7, %v900_v47 }
 0x124   : > { %521 = vst.msk [vmem:[#allocation2 + $0x78] sm:$0xff] %vm505_vm3, %v482_v50  ;;  %799 = vrot.lane.b32.xlu1 %v2427_v27, %s3119_s12 }
 0x125   : > { %350 = vrot.lane.b32.xlu0 %v2490_v49, %s3118_s8 }
 0x126   : > { %v568_v51 = vpop.permute.xlu1 %567  ;;  %v957_v55 = vpop.permute.xlu0 %956 }
 0x127   : > { %606 = vst.msk [vmem:[#allocation2 + $0x20] sm:$0xff] %vm601_vm4, %v568_v51 }
 0x128   : > { %977 = vst.msk [vmem:[#allocation2 + $0x68] sm:$0xff] %vm923_vm7, %v957_v55  ;;  %467 = vrot.lane.b32.xlu1 %v2518_v56, %s2207_s9 }
 0x129   : > { %861 = vrot.lane.b32.xlu0 %v847_v20, %s3119_s12 }
 0x12a   : > { %v1009_v58 = vpop.permute.xlu1 %1008  ;;  %v627_v12 = vpop.permute.xlu0 %626 }
 0x12b   : > { %1036 = vst.msk [vmem:[#allocation2 + $0x18] sm:$0xff] %vm1032_vm9, %v1009_v58 }
 0x12c   : > { %637 = vst.msk [vmem:[#allocation2 + $0x78] sm:$0xff] %vm601_vm4, %v627_v12  ;;  %964 = vrot.lane.b32.xlu1 %v941_v25, %s2211_s13 }
 0x12d   : > { %907 = vrot.lane.b32.xlu0 %v2341_v9, %s2211_s13 }
 0x12e   : > { %v677_v27 = vpop.permute.xlu1 %676  ;;  %v1069_v49 = vpop.permute.xlu0 %1068 }
 0x12f   : > { %715 = vst.msk [vmem:[#allocation2 + $0x20] sm:$0xff] %vm710_vm5, %v677_v27 }
 0x130   : > { %1092 = vst.msk [vmem:[#allocation2 + $0x66] sm:$0xff] %vm1032_vm9, %v1069_v49  ;;  %1016 = vrot.lane.b32.xlu1 %v2521_v57, %s2212_s29 }
 0x131   : > { %575 = vrot.lane.b32.xlu0 %v2506_v54, %s2208_s10  ;;  %s238_s10 = sand.u32 1, %s2188_s16  }
 0x132   : > { %v1126_v56 = vpop.permute.xlu1 %1125  ;;  %v739_v3 = vpop.permute.xlu0 %738  ;;  %s3061_s5 = scalar_lea.sflag [#allocation4], %s238_s10 }
 0x133   : > { %1153 = vst.msk [vmem:[#allocation2 + $0x18] sm:$0xff] %vm1149_vm10, %v1126_v56 }
 0x134   : > { %752 = vst.msk [vmem:[#allocation2 + $0x76] sm:$0xff] %vm710_vm5, %v739_v3  ;;  %684 = vrot.lane.b32.xlu1 %v2532_v59, %s2209_s11  ;;  %v1052_v59 = vld [vmem:[%s2432_s22 + $0x40] sm:$0x3]  ;;  %s1948_s11 = smul.u32 144, %s238_s10 }
 0x135   : > { %1076 = vrot.lane.b32.xlu0 %v941_v25, %s2212_s29 }
 0x136   : > { %v345_v9 = vpop.permute.xlu1 %344  ;;  %v1186_v60 = vpop.permute.xlu0 %1185 }
 0x137   : > { %394 = vst.msk [vmem:[#allocation2 + $0x28] sm:$0xff] %vm388_vm2, %v345_v9 }
 0x138   : > { %1209 = vst.msk [vmem:[#allocation2 + $0x64] sm:$0xff] %vm1149_vm10, %v1186_v60  ;;  %1193 = vrot.lane.b32.xlu1 %v941_v25, %s2214_s21  ;;  %v1249_v25 = vlaneseq }
 0x139   : > { %1133 = vrot.lane.b32.xlu0 %v2539_v61, %s2214_s21 }
 0x13a   : > { %v794_v54 = vpop.permute.xlu1 %793  ;;  %v367_v57 = vpop.permute.xlu0 %366  ;;  %v1218_v5 = vld [vmem:[#allocation2 + $0x18] sm:$0xff]  ;;  %v1250_v27 = vshrl.u32 %v1249_v25, 7 }
 0x13b   : > { %832 = vst.msk [vmem:[#allocation2 + $0x20] sm:$0xff] %vm827_vm6, %v794_v54  ;;  %1874 = vmatmul.mubr.msk.f32.gmra.mrb[6].mxu0 %vm1259_vm12, %v1218_v5  ;;  %v1247_v54 = vld [vmem:[%s3110_s3] sm:$0x3] }
 0x13c   : > { %405 = vst.msk [vmem:[#allocation2 + $0x80] sm:$0xff] %vm388_vm2, %v367_v57  ;;  %909 = vrot.lane.b32.xlu1 %v2364_v13, %s2211_s13  ;;  %1409 = vmatprep.mubr.f32.mxu0 %v2213_v53  ;;  %v1169_v13 = vld [vmem:[%s2432_s22 + $0x40] sm:$0xf]  ;;  %v1251_v60 = vsub.s32 0, %v1250_v27  ;;  %v1255_v57 = vsub.s32 1, %v1250_v27  ;;  %s2998_s22 = scalar_lea.vmem [#allocation3], %s1948_s11 }
 0x13d   : > { %801 = vrot.lane.b32.xlu0 %v2549_v63, %s3119_s12  ;;  %s1951_s13 = smul.u32 2304, %s2196_s18  ;;  %s1762_s24 = sshll.u32 %s2998_s22, 4  ;;  %s3056_s24 = int_to_ptr.vmem [resolvable:$true] %s1762_s24 }
 0x13e   : > { %v462_v61 = vpop.permute.xlu1 %461  ;;  %v856_v23 = vpop.permute.xlu0 %855  ;;  %s2126_s18 = scalar_lea.vmem %s3056_s24, 2304  ;;  %p2133_p1 = scmp.lt.s32.totalorder %s3056_s24, %s2131_s14 }
 0x13f   : > { %v1227_v34 = vld [vmem:[#allocation2 + $0x60] sm:$0xff]  ;;  %511 = vst.msk [vmem:[#allocation2 + $0x28] sm:$0xff] %vm505_vm3, %v462_v61  ;;  %v2970_v61 = vrot.slane %v1247_v54, %v1251_v60  ;;  %s3054_s30 = scalar_lea.hbm %s3111_s4, %s1951_s13  ;;  %p2127_p12 = scmp.ne.s32.totalorder %s3056_s24, %s2126_s18 }
 0x140   : > { %869 = vst.msk [vmem:[#allocation2 + $0x74] sm:$0xff] %vm827_vm6, %v856_v23  ;;  %1883 = vmatmul.mubr.msk.f32.gmra.mrb[6].mxu1 %vm1259_vm12, %v1227_v34  ;;  %1078 = vrot.lane.b32.xlu1 %v1052_v59, %s2212_s29  ;;  %v2972_v23 = vrot.slane %v1247_v54, %v1255_v57 }
 0x141   : > { %1018 = vrot.lane.b32.xlu0 %v2573_v15, %s2212_s29  ;;  %1463 = vmatprep.mubr.f32.mxu1 %v2213_v53  ;;  %p2128_p13 = pnand %p2127_p12, %p2283_p4 }
 0x142   : > { %v902_v63 = vpop.permute.xlu1 %901  ;;  %v484_v10 = vpop.permute.xlu0 %483 }
 0x143   : > { %928 = vst.msk [vmem:[#allocation2 + $0x20] sm:$0xff] %vm923_vm7, %v902_v63  ;;  %p2129_p0 = pneg %p2128_p13 }
 0x144   : > { %522 = vst.msk [vmem:[#allocation2 + $0x80] sm:$0xff] %vm505_vm3, %v484_v10  ;;  %1195 = vrot.lane.b32.xlu1 %v1169_v13, %s2214_s21 }
 0x145   : > { %1135 = vrot.lane.b32.xlu0 %v2599_v29, %s2214_s21  ;;  %s2132_s21 = scalar_lea.vmem %s2131_s14, 4608 }
 0x146   : > { %v570_v19 = vpop.permute.xlu1 %569  ;;  %p2134_p2 = scmp.lt.s32.totalorder %s2132_s21, %s2126_s18 }
 0x147   : > { %v959_v21 = vpop.permute.xlu0 %958  ;;  %607 = vst.msk [vmem:[#allocation2 + $0x28] sm:$0xff] %vm601_vm4, %v570_v19 }
 0x148   : > { %978 = vst.msk [vmem:[#allocation2 + $0x70] sm:$0xff] %vm923_vm7, %v959_v21  ;;  %p2135_p3 = por %p2134_p2, %p2133_p1 }
 0x14a   : > { %v1011_v15 = vpop.permute.xlu1 %1010  ;;  %p2136_p5 = pnand %p2135_p3, %p2129_p0 }
 0x14b   : > { %v629_v28 = vpop.permute.xlu0 %628  ;;  %1037 = vst.msk [vmem:[#allocation2 + $0x20] sm:$0xff] %vm1032_vm9, %v1011_v15 }
 0x14c   : > { %638 = vst.msk [vmem:[#allocation2 + $0x80] sm:$0xff] %vm601_vm4, %v629_v28 }
 0x14e   : > { %v679_v26 = vpop.permute.xlu1 %678 }
 0x14f   : > { %v1071_v31 = vpop.permute.xlu0 %1070  ;;  %716 = vst.msk [vmem:[#allocation2 + $0x28] sm:$0xff] %vm710_vm5, %v679_v26 }
 0x150   : > { %1093 = vst.msk [vmem:[#allocation2 + $0x6e] sm:$0xff] %vm1032_vm9, %v1071_v31 }
 0x152   : > { %v1128_v32 = vpop.permute.xlu1 %1127 }
 0x153   : > { %v741_v29 = vpop.permute.xlu0 %740  ;;  %1154 = vst.msk [vmem:[#allocation2 + $0x20] sm:$0xff] %vm1149_vm10, %v1128_v32 }
 0x154   : > { %753 = vst.msk [vmem:[#allocation2 + $0x7e] sm:$0xff] %vm710_vm5, %v741_v29 }
 0x156   : > { %v347_v30 = vpop.permute.xlu1 %346 }
 0x157   : > { %v1188_v33 = vpop.permute.xlu0 %1187  ;;  %395 = vst.msk [vmem:[#allocation2 + $0x30] sm:$0xff] %vm388_vm2, %v347_v30 }
 0x158   : > { %1210 = vst.msk [vmem:[#allocation2 + $0x6c] sm:$0xff] %vm1149_vm10, %v1188_v33 }
 0x15a   : > { %v411_v8 = vpop.permute.xlu1 %410  ;;  %v1219_v36 = vld [vmem:[#allocation2 + $0x20] sm:$0xff] }
 0x15b   : > { %v369_v24 = vpop.permute.xlu0 %368  ;;  %414 = vst.msk [vmem:[#allocation2 + $0x8e] sm:$0x3] %vm413_vm15, %v411_v8  ;;  %1875 = vmatmul.mubr.msk.f32.gmra.mrb[8].mxu0 %vm1259_vm12, %v1219_v36 }
 0x15c   : > { %407 = vst.msk [vmem:[#allocation2 + $0x88] sm:$0x3f] %vm406_vm0, %v369_v24  ;;  %1415 = vmatprep.mubr.f32.mxu0 %v2213_v53 }
 0x15e   : > { %v858_v37 = vpop.permute.xlu1 %857 }
 0x15f   : > { %v796_v4 = vpop.permute.xlu0 %795  ;;  %v1228_v39 = vld [vmem:[#allocation2 + $0x68] sm:$0xff]  ;;  %870 = vst.msk [vmem:[#allocation2 + $0x7c] sm:$0xff] %vm827_vm6, %v858_v37 }
 0x160   : > { %833 = vst.msk [vmem:[#allocation2 + $0x28] sm:$0xff] %vm827_vm6, %v796_v4  ;;  %1884 = vmatmul.mubr.msk.f32.gmra.mrb[8].mxu1 %vm1259_vm12, %v1228_v39 }
 0x161   : > { %1469 = vmatprep.mubr.f32.mxu1 %v2213_v53 }
 0x162   : > { %v486_v52 = vpop.permute.xlu1 %485 }
 0x163   : > { %v464_v35 = vpop.permute.xlu0 %463  ;;  %524 = vst.msk [vmem:[#allocation2 + $0x88] sm:$0xf] %vm523_vm1, %v486_v52 }
 0x164   : > { %512 = vst.msk [vmem:[#allocation2 + $0x30] sm:$0xff] %vm505_vm3, %v464_v35 }
 0x166   : > { %v904_v14 = vpop.permute.xlu1 %903 }
 0x167   : > { %v528_v40 = vpop.permute.xlu0 %527  ;;  %929 = vst.msk [vmem:[#allocation2 + $0x28] sm:$0xff] %vm923_vm7, %v904_v14 }
 0x168   : > { %530 = vst.msk [vmem:[#allocation2 + $0x8c] sm:$0xf] %vm523_vm1, %v528_v40 }
 0x16a   : > { %v572_v17 = vpop.permute.xlu1 %571 }
 0x16b   : > { %v961_v41 = vpop.permute.xlu0 %960  ;;  %608 = vst.msk [vmem:[#allocation2 + $0x30] sm:$0xff] %vm601_vm4, %v572_v17 }
 0x16c   : > { %979 = vst.msk [vmem:[#allocation2 + $0x78] sm:$0xff] %vm923_vm7, %v961_v41 }
 0x16e   : > { %v1013_v0 = vpop.permute.xlu1 %1012 }
 0x16f   : > { %v631_v62 = vpop.permute.xlu0 %630  ;;  %1038 = vst.msk [vmem:[#allocation2 + $0x28] sm:$0xff] %vm1032_vm9, %v1013_v0 }
 0x170   : > { %639 = vst.msk [vmem:[#allocation2 + $0x88] sm:$0xff] %vm601_vm4, %v631_v62 }
 0x172   : > { %v681_v22 = vpop.permute.xlu1 %680 }
 0x173   : > { %v1073_v2 = vpop.permute.xlu0 %1072  ;;  %717 = vst.msk [vmem:[#allocation2 + $0x30] sm:$0xff] %vm710_vm5, %v681_v22 }
 0x174   : > { %1094 = vst.msk [vmem:[#allocation2 + $0x76] sm:$0xff] %vm1032_vm9, %v1073_v2 }
 0x176   : > { %v1130_v38 = vpop.permute.xlu1 %1129 }
 0x177   : > { %v743_v42 = vpop.permute.xlu0 %742  ;;  %1155 = vst.msk [vmem:[#allocation2 + $0x28] sm:$0xff] %vm1149_vm10, %v1130_v38 }
 0x178   : > { %754 = vst.msk [vmem:[#allocation2 + $0x86] sm:$0xff] %vm710_vm5, %v743_v42 }
 0x17a   : > { %v349_v1 = vpop.permute.xlu1 %348 }
 0x17b   : > { %v1190_v7 = vpop.permute.xlu0 %1189  ;;  %396 = vst.msk [vmem:[#allocation2 + $0x38] sm:$0xff] %vm388_vm2, %v349_v1 }
 0x17c   : > { %1211 = vst.msk [vmem:[#allocation2 + $0x74] sm:$0xff] %vm1149_vm10, %v1190_v7 }
 0x17e   : > { %v860_v43 = vpop.permute.xlu1 %859  ;;  %v1220_v6 = vld [vmem:[#allocation2 + $0x28] sm:$0xff] }
 0x17f   : > { %v798_v44 = vpop.permute.xlu0 %797  ;;  %871 = vst.msk [vmem:[#allocation2 + $0x84] sm:$0xff] %vm827_vm6, %v860_v43  ;;  %1876 = vmatmul.mubr.msk.f32.gmra.mrb[10].mxu0 %vm1259_vm12, %v1220_v6 }
 0x180   : > { %834 = vst.msk [vmem:[#allocation2 + $0x30] sm:$0xff] %vm827_vm6, %v798_v44  ;;  %1421 = vmatprep.mubr.f32.mxu0 %v2213_v53 }
 0x182   : > { %v906_v48 = vpop.permute.xlu1 %905 }
 0x183   : > { %v466_v18 = vpop.permute.xlu0 %465  ;;  %v1229_v45 = vld [vmem:[#allocation2 + $0x70] sm:$0xff]  ;;  %930 = vst.msk [vmem:[#allocation2 + $0x30] sm:$0xff] %vm923_vm7, %v906_v48 }
 0x184   : > { %513 = vst.msk [vmem:[#allocation2 + $0x38] sm:$0xff] %vm505_vm3, %v466_v18  ;;  %1885 = vmatmul.mubr.msk.f32.gmra.mrb[10].mxu1 %vm1259_vm12, %v1229_v45 }
 0x185   : > { %1475 = vmatprep.mubr.f32.mxu1 %v2213_v53 }
 0x186   : > { %v574_v46 = vpop.permute.xlu1 %573 }
 0x187   : > { %v963_v16 = vpop.permute.xlu0 %962  ;;  %609 = vst.msk [vmem:[#allocation2 + $0x38] sm:$0xff] %vm601_vm4, %v574_v46 }
 0x188   : > { %980 = vst.msk [vmem:[#allocation2 + $0x80] sm:$0xff] %vm923_vm7, %v963_v16 }
 0x18a   : > { %v1075_v11 = vpop.permute.xlu1 %1074 }
 0x18b   : > { %v1015_v47 = vpop.permute.xlu0 %1014  ;;  %1095 = vst.msk [vmem:[#allocation2 + $0x7e] sm:$0xff] %vm1032_vm9, %v1075_v11 }
 0x18c   : > { %1039 = vst.msk [vmem:[#allocation2 + $0x30] sm:$0xff] %vm1032_vm9, %v1015_v47 }
 0x18e   : > { %v745_v50 = vpop.permute.xlu1 %744 }
 0x18f   : > { %v683_v20 = vpop.permute.xlu0 %682  ;;  %756 = vst.msk [vmem:[#allocation2 + $0x8e] sm:$0x3] %vm755_vm8, %v745_v50 }
 0x190   : > { %718 = vst.msk [vmem:[#allocation2 + $0x38] sm:$0xff] %vm710_vm5, %v683_v20 }
 0x192   : > { %v1192_v51 = vpop.permute.xlu1 %1191 }
 0x193   : > { %v1132_v55 = vpop.permute.xlu0 %1131  ;;  %1212 = vst.msk [vmem:[#allocation2 + $0x7c] sm:$0xff] %vm1149_vm10, %v1192_v51 }
 0x194   : > { %1156 = vst.msk [vmem:[#allocation2 + $0x30] sm:$0xff] %vm1149_vm10, %v1132_v55 }
 0x196   : > { %v800_v58 = vpop.permute.xlu1 %799 }
 0x197   : > { %v351_v12 = vpop.permute.xlu0 %350  ;;  %835 = vst.msk [vmem:[#allocation2 + $0x38] sm:$0xff] %vm827_vm6, %v800_v58 }
 0x198   : > { %397 = vst.msk [vmem:[#allocation2 + $0x40] sm:$0xff] %vm388_vm2, %v351_v12  ;;  %vm1097_vm2 = vcmask 386384  }
 0x19a   : > { %v468_v49 = vpop.permute.xlu1 %467  ;;  %v1230_v9 = vld [vmem:[#allocation2 + $0x78] sm:$0xff] }
 0x19b   : > { %v862_v56 = vpop.permute.xlu0 %861  ;;  %v1221_v3 = vld [vmem:[#allocation2 + $0x30] sm:$0xff]  ;;  %514 = vst.msk [vmem:[#allocation2 + $0x40] sm:$0xff] %vm505_vm3, %v468_v49  ;;  %1886 = vmatmul.mubr.msk.f32.gmra.mrb[12].mxu1 %vm1259_vm12, %v1230_v9 }
 0x19c   : > { %872 = vst.msk [vmem:[#allocation2 + $0x8c] sm:$0xf] %vm841_vm14, %v862_v56  ;;  %1877 = vmatmul.mubr.msk.f32.gmra.mrb[12].mxu0 %vm1259_vm12, %v1221_v3  ;;  %1481 = vmatprep.mubr.f32.mxu1 %v2213_v53 }
 0x19d   : > { %1427 = vmatprep.mubr.f32.mxu0 %v2213_v53 }
 0x19e   : > { %v965_v5 = vpop.permute.xlu1 %964 }
 0x19f   : > { %v908_v59 = vpop.permute.xlu0 %907  ;;  %981 = vst.msk [vmem:[#allocation2 + $0x88] sm:$0xff] %vm923_vm7, %v965_v5 }
 0x1a0   : > { %931 = vst.msk [vmem:[#allocation2 + $0x38] sm:$0xff] %vm923_vm7, %v908_v59 }
 0x1a2   : > { %v1017_v34 = vpop.permute.xlu1 %1016  ;;  %v1387_v63 = vpop.f32.mrb[0].mxu0 }
 0x1a3   : > { %v576_v13 = vpop.permute.xlu0 %575  ;;  %1040 = vst.msk [vmem:[#allocation2 + $0x38] sm:$0xff] %vm1032_vm9, %v1017_v34  ;;  %v1388_v10 = vadd.f32 %v1387_v63, %v2970_v61  ;;  %v1389_v19 = vpop.f32.mrb[1].mxu0 }
 0x1a4   : > { %610 = vst.msk [vmem:[#allocation2 + $0x40] sm:$0xff] %vm601_vm4, %v576_v13  ;;  %v1390_v21 = vadd.f32 %v1389_v19, %v2972_v23 }
 0x1a5   : > { %v1512_v26 = vmin.f32 %v1388_v10, 0.0  ;;  %vm1494_vm3 = vcmp.gt.f32.partialorder %v1388_v10, 0.0 }
 0x1a6   : > { %v685_v15 = vpop.permute.xlu1 %684  ;;  %v1907_v31 = vmul.f32 -1.442695, %v1390_v21 }
 0x1a7   : > { %v1077_v28 = vpop.permute.xlu0 %1076  ;;  %719 = vst.msk [vmem:[#allocation2 + $0x40] sm:$0xff] %vm710_vm5, %v685_v15  ;;  %v1441_v32 = vpop.f32.mrb[0].mxu1  ;;  %v1530_v36 = vmul.f32 1.442695, %v1512_v26 }
 0x1a8   : > { %1096 = vst.msk [vmem:[#allocation2 + $0x86] sm:$0xff] %vm1032_vm9, %v1077_v28  ;;  %v1442_v29 = vadd.f32 %v1441_v32, %v2970_v61  ;;  %v1443_v30 = vpop.f32.mrb[1].mxu1  ;;  %2018 = vpow2.f32 %v1907_v31 }
 0x1a9   : > { %v1444_v33 = vadd.f32 %v1443_v30, %v2972_v23 }
 0x1aa   : > { %v1194_v8 = vpop.permute.xlu1 %1193  ;;  %v1521_v37 = vmin.f32 %v1442_v29, 0.0  ;;  %vm1503_vm4 = vcmp.gt.f32.partialorder %v1442_v29, 0.0 }
 0x1ab   : > { %v1134_v24 = vpop.permute.xlu0 %1133  ;;  %v1916_v4 = vmul.f32 -1.442695, %v1444_v33  ;;  %1213 = vst.msk [vmem:[#allocation2 + $0x84] sm:$0xff] %vm1149_vm10, %v1194_v8 }
 0x1ac   : > { %1157 = vst.msk [vmem:[#allocation2 + $0x38] sm:$0xff] %vm1149_vm10, %v1134_v24  ;;  %v1548_v35 = vmul.f32 1.442695, %v1521_v37 }
 0x1ad   : > { %2020 = vpow2.f32 %v1916_v4 }
 0x1ae   : > { %v910_v39 = vpop.permute.xlu1 %909  ;;  %2022 = vpow2.f32 %v1530_v36 }
 0x1af   : > { %v802_v52 = vpop.permute.xlu0 %801  ;;  %2024 = vpow2.f32 %v1548_v35 }
 0x1b0   : > { %836 = vst.msk [vmem:[#allocation2 + $0x40] sm:$0xff] %vm827_vm6, %v802_v52 }
 0x1b1   : > { %932 = vst.msk [vmem:[#allocation2 + $0x40] sm:$0xff] %vm923_vm7, %v910_v39 }
 0x1b2   : > { %v1079_v14 = vpop.permute.xlu1 %1078  ;;  %v1231_v41 = vld [vmem:[#allocation2 + $0x80] sm:$0xff]  ;;  %v2019_v0 = vpop.eup %2018 }
 0x1b3   : > { %v1019_v40 = vpop.permute.xlu0 %1018  ;;  %v1222_v17 = vld [vmem:[#allocation2 + $0x38] sm:$0xff]  ;;  %1098 = vst.msk [vmem:[#allocation2 + $0x8e] sm:$0x3] %vm1097_vm2, %v1079_v14  ;;  %1887 = vmatmul.mubr.msk.f32.gmra.mrb[14].mxu1 %vm1259_vm12, %v1231_v41  ;;  %v1656_v62 = vadd.f32 1.0, %v2019_v0 }
 0x1b4   : > { %1041 = vst.msk [vmem:[#allocation2 + $0x40] sm:$0xff] %vm1032_vm9, %v1019_v40  ;;  %1878 = vmatmul.mubr.msk.f32.gmra.mrb[14].mxu0 %vm1259_vm12, %v1222_v17  ;;  %1487 = vmatprep.mubr.f32.mxu1 %v2213_v53 }
 0x1b5   : > { %1433 = vmatprep.mubr.f32.mxu0 %v2213_v53  ;;  %2026 = vrcp.f32 %v1656_v62 }
 0x1b6   : > { %v1196_v22 = vpop.permute.xlu1 %1195 }
 0x1b7   : > { %v1136_v2 = vpop.permute.xlu0 %1135  ;;  %v2021_v38 = vpop.eup %2020  ;;  %1214 = vst.msk [vmem:[#allocation2 + $0x8c] sm:$0xf] %vm1159_vm11, %v1196_v22 }
 0x1b8   : > { %1158 = vst.msk [vmem:[#allocation2 + $0x40] sm:$0xff] %vm1149_vm10, %v1136_v2  ;;  %v1665_v42 = vadd.f32 1.0, %v2021_v38  ;;  %v2023_v1 = vpop.eup %2022 }
 0x1b9   : > { %v1889_v7 = vadd.f32 -1.0, %v2023_v1  ;;  %v2025_v43 = vpop.eup %2024 }
 0x1ba   : > { %2028 = vrcp.f32 %v1665_v42  ;;  %v1898_v18 = vadd.f32 -1.0, %v2025_v43 }
 0x1bb   : > { %v1584_v48 = vsel %vm1494_vm3, %v1388_v10, %v1889_v7 }
 0x1bc   : > { %v1593_v16 = vsel %vm1503_vm4, %v1442_v29, %v1898_v18 }
 0x1be   : > { %v1232_v6 = vld [vmem:[#allocation2 + $0x88] sm:$0xff] }
 0x1bf   : > { %v1223_v44 = vld [vmem:[#allocation2 + $0x40] sm:$0xff]  ;;  %1888 = vmatmul.mubr.msk.f32.gmra.mrb[16].mxu1 %vm1259_vm12, %v1232_v6  ;;  %v2027_v53 = vpop.eup %2026 }
 0x1c0   : > { %1879 = vmatmul.mubr.msk.f32.gmra.mrb[16].mxu0 %vm1259_vm12, %v1223_v44  ;;  %v1710_v45 = vmul.f32 %v2027_v53, %v1584_v48 }
 0x1c2   : > { %1728 = vst [vmem:[%s2998_s22] sm:$0xff] %v1710_v45 }
 0x1c4   : > { %v2029_v46 = vpop.eup %2028 }
 0x1c5   : > { %v1719_v11 = vmul.f32 %v2029_v46, %v1593_v16 }
 0x1c6   : > { %v1393_v47 = vpop.f32.mrb[2].mxu0  ;;  %v1447_v50 = vpop.f32.mrb[2].mxu1 }
 0x1c7   : > { %1737 = vst [vmem:[%s2998_s22 + $0x48] sm:$0xff] %v1719_v11  ;;  %v1394_v20 = vadd.f32 %v1393_v47, %v2970_v61  ;;  %v1395_v51 = vpop.f32.mrb[3].mxu0  ;;  %v1449_v55 = vpop.f32.mrb[3].mxu1  ;;  %v1448_v12 = vadd.f32 %v1447_v50, %v2970_v61 }
 0x1c8   : > { %v1396_v25 = vadd.f32 %v1395_v51, %v2972_v23  ;;  %v1450_v58 = vadd.f32 %v1449_v55, %v2972_v23 }
 0x1c9   : > { %v1513_v27 = vmin.f32 %v1394_v20, 0.0  ;;  %v1522_v3 = vmin.f32 %v1448_v12, 0.0  ;;  %vm1495_vm5 = vcmp.gt.f32.partialorder %v1394_v20, 0.0  ;;  %vm1504_vm6 = vcmp.gt.f32.partialorder %v1448_v12, 0.0 }
 0x1ca   : > { %v1908_v49 = vmul.f32 -1.442695, %v1396_v25  ;;  %v1917_v56 = vmul.f32 -1.442695, %v1450_v58 }
 0x1cb   : > { %v1532_v9 = vmul.f32 1.442695, %v1513_v27  ;;  %v1550_v60 = vmul.f32 1.442695, %v1522_v3 }
 0x1cc   : > { %2030 = vpow2.f32 %v1908_v49 }
 0x1cd   : > { %2032 = vpow2.f32 %v1917_v56 }
 0x1ce   : > { %2034 = vpow2.f32 %v1532_v9 }
 0x1cf   : > { %2036 = vpow2.f32 %v1550_v60 }
 0x1d6   : > { %v2031_v54 = vpop.eup %2030 }
 0x1d7   : > { %v1657_v57 = vadd.f32 1.0, %v2031_v54  ;;  %v2033_v5 = vpop.eup %2032 }
 0x1d8   : > { %v1666_v59 = vadd.f32 1.0, %v2033_v5  ;;  %v2035_v34 = vpop.eup %2034 }
 0x1d9   : > { %2038 = vrcp.f32 %v1657_v57  ;;  %v2037_v13 = vpop.eup %2036  ;;  %v1890_v63 = vadd.f32 -1.0, %v2035_v34 }
 0x1da   : > { %2040 = vrcp.f32 %v1666_v59  ;;  %v1899_v10 = vadd.f32 -1.0, %v2037_v13 }
 0x1db   : > { %v1585_v21 = vsel %vm1495_vm5, %v1394_v20, %v1890_v63 }
 0x1dc   : > { %v1594_v26 = vsel %vm1504_vm6, %v1448_v12, %v1899_v10 }
 0x1e3   : > { %v2039_v19 = vpop.eup %2038 }
 0x1e4   : > { %v1711_v15 = vmul.f32 %v2039_v19, %v1585_v21  ;;  %v2041_v28 = vpop.eup %2040 }
 0x1e5   : > { %v1720_v31 = vmul.f32 %v2041_v28, %v1594_v26 }
 0x1e6   : > { %1729 = vst [vmem:[%s2998_s22 + $0x8] sm:$0xff] %v1711_v15 }
 0x1e7   : > { %1738 = vst [vmem:[%s2998_s22 + $0x50] sm:$0xff] %v1720_v31 }
 0x1ee   : > { %v1399_v32 = vpop.f32.mrb[4].mxu0  ;;  %v1453_v29 = vpop.f32.mrb[4].mxu1 }
 0x1ef   : > { %v1400_v30 = vadd.f32 %v1399_v32, %v2970_v61  ;;  %v1401_v33 = vpop.f32.mrb[5].mxu0  ;;  %v1455_v8 = vpop.f32.mrb[5].mxu1  ;;  %v1454_v37 = vadd.f32 %v1453_v29, %v2970_v61 }
 0x1f0   : > { %v1402_v24 = vadd.f32 %v1401_v33, %v2972_v23  ;;  %v1456_v36 = vadd.f32 %v1455_v8, %v2972_v23 }
 0x1f1   : > { %v1514_v4 = vmin.f32 %v1400_v30, 0.0  ;;  %v1523_v35 = vmin.f32 %v1454_v37, 0.0  ;;  %vm1496_vm7 = vcmp.gt.f32.partialorder %v1400_v30, 0.0  ;;  %vm1505_vm9 = vcmp.gt.f32.partialorder %v1454_v37, 0.0 }
 0x1f2   : > { %v1909_v39 = vmul.f32 -1.442695, %v1402_v24  ;;  %v1918_v52 = vmul.f32 -1.442695, %v1456_v36 }
 0x1f3   : > { %v1534_v14 = vmul.f32 1.442695, %v1514_v4  ;;  %v1552_v40 = vmul.f32 1.442695, %v1523_v35 }
 0x1f4   : > { %2042 = vpow2.f32 %v1909_v39 }
 0x1f5   : > { %2044 = vpow2.f32 %v1918_v52 }
 0x1f6   : > { %2046 = vpow2.f32 %v1534_v14 }
 0x1f7   : > { %2048 = vpow2.f32 %v1552_v40 }
 0x1fe   : > { %v2043_v17 = vpop.eup %2042 }
 0x1ff   : > { %v1658_v41 = vadd.f32 1.0, %v2043_v17  ;;  %v2045_v0 = vpop.eup %2044 }
 0x200   : > { %v1667_v62 = vadd.f32 1.0, %v2045_v0  ;;  %v2047_v22 = vpop.eup %2046 }
 0x201   : > { %2050 = vrcp.f32 %v1658_v41  ;;  %v2049_v2 = vpop.eup %2048  ;;  %v1891_v38 = vadd.f32 -1.0, %v2047_v22 }
 0x202   : > { %2052 = vrcp.f32 %v1667_v62  ;;  %v1900_v42 = vadd.f32 -1.0, %v2049_v2 }
 0x203   : > { %v1586_v7 = vsel %vm1496_vm7, %v1400_v30, %v1891_v38 }
 0x204   : > { %v1595_v6 = vsel %vm1505_vm9, %v1454_v37, %v1900_v42 }
 0x20b   : > { %v2051_v1 = vpop.eup %2050 }
 0x20c   : > { %v1712_v43 = vmul.f32 %v2051_v1, %v1586_v7  ;;  %v2053_v44 = vpop.eup %2052 }
 0x20d   : > { %v1721_v48 = vmul.f32 %v2053_v44, %v1595_v6 }
 0x20e   : > { %1730 = vst [vmem:[%s2998_s22 + $0x10] sm:$0xff] %v1712_v43  ;;  %v1405_v53 = vpop.f32.mrb[6].mxu0 }
 0x20f   : > { %v1406_v18 = vadd.f32 %v1405_v53, %v2970_v61  ;;  %v1407_v45 = vpop.f32.mrb[7].mxu0  ;;  %1739 = vst [vmem:[%s2998_s22 + $0x58] sm:$0xff] %v1721_v48 }
 0x210   : > { %v1408_v46 = vadd.f32 %v1407_v45, %v2972_v23 }
 0x211   : > { %v1515_v16 = vmin.f32 %v1406_v18, 0.0  ;;  %vm1497_vm10 = vcmp.gt.f32.partialorder %v1406_v18, 0.0 }
 0x212   : > { %v1910_v11 = vmul.f32 -1.442695, %v1408_v46 }
 0x213   : > { %v1459_v47 = vpop.f32.mrb[6].mxu1  ;;  %v1536_v55 = vmul.f32 1.442695, %v1515_v16 }
 0x214   : > { %v1460_v50 = vadd.f32 %v1459_v47, %v2970_v61  ;;  %v1461_v20 = vpop.f32.mrb[7].mxu1  ;;  %2054 = vpow2.f32 %v1910_v11 }
 0x215   : > { %v1462_v51 = vadd.f32 %v1461_v20, %v2972_v23 }
 0x216   : > { %v1524_v25 = vmin.f32 %v1460_v50, 0.0  ;;  %vm1506_vm11 = vcmp.gt.f32.partialorder %v1460_v50, 0.0 }
 0x217   : > { %v1919_v58 = vmul.f32 -1.442695, %v1462_v51 }
 0x218   : > { %v1554_v12 = vmul.f32 1.442695, %v1524_v25 }
 0x219   : > { %2056 = vpow2.f32 %v1919_v58 }
 0x21a   : > { %2058 = vpow2.f32 %v1536_v55 }
 0x21b   : > { %2060 = vpow2.f32 %v1554_v12 }
 0x21e   : > { %v2055_v27 = vpop.eup %2054 }
 0x21f   : > { %v1659_v49 = vadd.f32 1.0, %v2055_v27 }
 0x221   : > { %2062 = vrcp.f32 %v1659_v49 }
 0x223   : > { %v2057_v56 = vpop.eup %2056 }
 0x224   : > { %v1668_v3 = vadd.f32 1.0, %v2057_v56  ;;  %v2059_v9 = vpop.eup %2058 }
 0x225   : > { %v1892_v60 = vadd.f32 -1.0, %v2059_v9  ;;  %v2061_v54 = vpop.eup %2060 }
 0x226   : > { %2064 = vrcp.f32 %v1668_v3  ;;  %v1901_v59 = vadd.f32 -1.0, %v2061_v54 }
 0x227   : > { %v1587_v5 = vsel %vm1497_vm10, %v1406_v18, %v1892_v60 }
 0x228   : > { %v1596_v10 = vsel %vm1506_vm11, %v1460_v50, %v1901_v59 }
 0x22b   : > { %v2063_v57 = vpop.eup %2062 }
 0x22c   : > { %v1713_v34 = vmul.f32 %v2063_v57, %v1587_v5 }
 0x22e   : > { %1731 = vst [vmem:[%s2998_s22 + $0x18] sm:$0xff] %v1713_v34  ;;  %v1411_v13 = vpop.f32.mrb[8].mxu0 }
 0x22f   : > { %v1412_v19 = vadd.f32 %v1411_v13, %v2970_v61  ;;  %v1413_v21 = vpop.f32.mrb[9].mxu0 }
 0x230   : > { %v2065_v63 = vpop.eup %2064  ;;  %v1414_v28 = vadd.f32 %v1413_v21, %v2972_v23 }
 0x231   : > { %v1722_v15 = vmul.f32 %v2065_v63, %v1596_v10  ;;  %v1516_v26 = vmin.f32 %v1412_v19, 0.0  ;;  %vm1498_vm12 = vcmp.gt.f32.partialorder %v1412_v19, 0.0 }
 0x232   : > { %v1911_v31 = vmul.f32 -1.442695, %v1414_v28 }
 0x233   : > { %1740 = vst [vmem:[%s2998_s22 + $0x60] sm:$0xff] %v1722_v15  ;;  %v1465_v32 = vpop.f32.mrb[8].mxu1  ;;  %v1538_v8 = vmul.f32 1.442695, %v1516_v26 }
 0x234   : > { %v1466_v29 = vadd.f32 %v1465_v32, %v2970_v61  ;;  %v1467_v30 = vpop.f32.mrb[9].mxu1  ;;  %2066 = vpow2.f32 %v1911_v31 }
 0x235   : > { %v1468_v33 = vadd.f32 %v1467_v30, %v2972_v23 }
 0x236   : > { %v1525_v24 = vmin.f32 %v1466_v29, 0.0  ;;  %vm1507_vm13 = vcmp.gt.f32.partialorder %v1466_v29, 0.0 }
 0x237   : > { %v1920_v36 = vmul.f32 -1.442695, %v1468_v33 }
 0x238   : > { %v1556_v37 = vmul.f32 1.442695, %v1525_v24 }
 0x239   : > { %2068 = vpow2.f32 %v1920_v36 }
 0x23a   : > { %2070 = vpow2.f32 %v1538_v8 }
 0x23b   : > { %2072 = vpow2.f32 %v1556_v37 }
 0x23e   : > { %v2067_v4 = vpop.eup %2066 }
 0x23f   : > { %v1660_v39 = vadd.f32 1.0, %v2067_v4 }
 0x241   : > { %2074 = vrcp.f32 %v1660_v39 }
 0x243   : > { %v2069_v52 = vpop.eup %2068 }
 0x244   : > { %v1669_v35 = vadd.f32 1.0, %v2069_v52  ;;  %v2071_v14 = vpop.eup %2070 }
 0x245   : > { %v1893_v40 = vadd.f32 -1.0, %v2071_v14  ;;  %v2073_v17 = vpop.eup %2072 }
 0x246   : > { %2076 = vrcp.f32 %v1669_v35  ;;  %v1902_v62 = vadd.f32 -1.0, %v2073_v17 }
 0x247   : > { %v1588_v0 = vsel %vm1498_vm12, %v1412_v19, %v1893_v40 }
 0x248   : > { %v1597_v38 = vsel %vm1507_vm13, %v1466_v29, %v1902_v62 }
 0x24b   : > { %v2075_v41 = vpop.eup %2074 }
 0x24c   : > { %v1714_v22 = vmul.f32 %v2075_v41, %v1588_v0 }
 0x24e   : > { %1732 = vst [vmem:[%s2998_s22 + $0x20] sm:$0xff] %v1714_v22 }
 0x250   : > { %v2077_v2 = vpop.eup %2076 }
 0x251   : > { %v1723_v42 = vmul.f32 %v2077_v2, %v1597_v38 }
 0x252   : > { %v1417_v1 = vpop.f32.mrb[10].mxu0 }
 0x253   : > { %1741 = vst [vmem:[%s2998_s22 + $0x68] sm:$0xff] %v1723_v42  ;;  %v1418_v7 = vadd.f32 %v1417_v1, %v2970_v61  ;;  %v1419_v43 = vpop.f32.mrb[11].mxu0 }
 0x254   : > { %v1420_v44 = vadd.f32 %v1419_v43, %v2972_v23 }
 0x255   : > { %v1517_v6 = vmin.f32 %v1418_v7, 0.0  ;;  %vm1499_vm14 = vcmp.gt.f32.partialorder %v1418_v7, 0.0 }
 0x256   : > { %v1912_v53 = vmul.f32 -1.442695, %v1420_v44 }
 0x257   : > { %v1471_v48 = vpop.f32.mrb[10].mxu1  ;;  %v1540_v16 = vmul.f32 1.442695, %v1517_v6 }
 0x258   : > { %v1472_v18 = vadd.f32 %v1471_v48, %v2970_v61  ;;  %v1473_v45 = vpop.f32.mrb[11].mxu1  ;;  %2078 = vpow2.f32 %v1912_v53 }
 0x259   : > { %v1474_v46 = vadd.f32 %v1473_v45, %v2972_v23 }
 0x25a   : > { %v1526_v11 = vmin.f32 %v1472_v18, 0.0  ;;  %vm1508_vm15 = vcmp.gt.f32.partialorder %v1472_v18, 0.0 }
 0x25b   : > { %v1921_v47 = vmul.f32 -1.442695, %v1474_v46 }
 0x25c   : > { %v1558_v50 = vmul.f32 1.442695, %v1526_v11 }
 0x25d   : > { %2080 = vpow2.f32 %v1921_v47 }
 0x25e   : > { %2082 = vpow2.f32 %v1540_v16 }
 0x25f   : > { %2084 = vpow2.f32 %v1558_v50 }
 0x262   : > { %v2079_v20 = vpop.eup %2078 }
 0x263   : > { %v1661_v51 = vadd.f32 1.0, %v2079_v20 }
 0x265   : > { %2086 = vrcp.f32 %v1661_v51 }
 0x267   : > { %v2081_v55 = vpop.eup %2080 }
 0x268   : > { %v1670_v25 = vadd.f32 1.0, %v2081_v55  ;;  %v2083_v58 = vpop.eup %2082 }
 0x269   : > { %v1894_v12 = vadd.f32 -1.0, %v2083_v58  ;;  %v2085_v27 = vpop.eup %2084 }
 0x26a   : > { %2088 = vrcp.f32 %v1670_v25  ;;  %v1903_v60 = vadd.f32 -1.0, %v2085_v27 }
 0x26b   : > { %v1589_v9 = vsel %vm1499_vm14, %v1418_v7, %v1894_v12 }
 0x26c   : > { %v1598_v15 = vsel %vm1508_vm15, %v1472_v18, %v1903_v60 }
 0x26e   : > { %v1477_v56 = vpop.f32.mrb[12].mxu1 }
 0x26f   : > { %v1423_v49 = vpop.f32.mrb[12].mxu0  ;;  %v2087_v3 = vpop.eup %2086  ;;  %v1478_v63 = vadd.f32 %v1477_v56, %v2970_v61 }
 0x270   : > { %v1424_v54 = vadd.f32 %v1423_v49, %v2970_v61  ;;  %v1425_v57 = vpop.f32.mrb[13].mxu0  ;;  %v1479_v5 = vpop.f32.mrb[13].mxu1  ;;  %v1715_v59 = vmul.f32 %v2087_v3, %v1589_v9 }
 0x271   : > { %v1426_v34 = vadd.f32 %v1425_v57, %v2972_v23  ;;  %v1480_v13 = vadd.f32 %v1479_v5, %v2972_v23  ;;  %v1527_v31 = vmin.f32 %v1478_v63, 0.0  ;;  %vm1509_vm1 = vcmp.gt.f32.partialorder %v1478_v63, 0.0 }
 0x272   : > { %1733 = vst [vmem:[%s2998_s22 + $0x28] sm:$0xff] %v1715_v59  ;;  %v1518_v10 = vmin.f32 %v1424_v54, 0.0  ;;  %vm1500_vm0 = vcmp.gt.f32.partialorder %v1424_v54, 0.0 }
 0x273   : > { %v1913_v19 = vmul.f32 -1.442695, %v1426_v34  ;;  %v1922_v28 = vmul.f32 -1.442695, %v1480_v13  ;;  %v1560_v29 = vmul.f32 1.442695, %v1527_v31 }
 0x274   : > { %v2089_v21 = vpop.eup %2088  ;;  %v1542_v32 = vmul.f32 1.442695, %v1518_v10 }
 0x275   : > { %v1724_v26 = vmul.f32 %v2089_v21, %v1598_v15  ;;  %2090 = vpow2.f32 %v1913_v19 }
 0x276   : > { %2092 = vpow2.f32 %v1922_v28 }
 0x277   : > { %1742 = vst [vmem:[%s2998_s22 + $0x70] sm:$0xff] %v1724_v26  ;;  %2094 = vpow2.f32 %v1542_v32 }
 0x278   : > { %2096 = vpow2.f32 %v1560_v29 }
 0x27f   : > { %v2091_v30 = vpop.eup %2090 }
 0x280   : > { %v1662_v33 = vadd.f32 1.0, %v2091_v30  ;;  %v2093_v8 = vpop.eup %2092 }
 0x281   : > { %v1671_v24 = vadd.f32 1.0, %v2093_v8  ;;  %v2095_v36 = vpop.eup %2094 }
 0x282   : > { %2098 = vrcp.f32 %v1662_v33  ;;  %v2097_v39 = vpop.eup %2096  ;;  %v1895_v52 = vadd.f32 -1.0, %v2095_v36 }
 0x283   : > { %2100 = vrcp.f32 %v1671_v24  ;;  %v1904_v62 = vadd.f32 -1.0, %v2097_v39 }
 0x284   : > { %v1590_v42 = vsel %vm1500_vm0, %v1424_v54, %v1895_v52 }
 0x285   : > { %v1599_v6 = vsel %vm1509_vm1, %v1478_v63, %v1904_v62 }
 0x286   : > { %v1483_v4 = vpop.f32.mrb[14].mxu1 }
 0x287   : > { %v1429_v37 = vpop.f32.mrb[14].mxu0  ;;  %v1485_v40 = vpop.f32.mrb[15].mxu1  ;;  %v1484_v0 = vadd.f32 %v1483_v4, %v2970_v61 }
 0x288   : > { %v1430_v35 = vadd.f32 %v1429_v37, %v2970_v61  ;;  %v1431_v14 = vpop.f32.mrb[15].mxu0  ;;  %v1486_v41 = vadd.f32 %v1485_v40, %v2972_v23 }
 0x289   : > { %v1432_v17 = vadd.f32 %v1431_v14, %v2972_v23  ;;  %v1528_v43 = vmin.f32 %v1484_v0, 0.0  ;;  %vm1510_vm2 = vcmp.gt.f32.partialorder %v1484_v0, 0.0 }
 0x28a   : > { %v1519_v22 = vmin.f32 %v1430_v35, 0.0  ;;  %v1923_v1 = vmul.f32 -1.442695, %v1486_v41  ;;  %vm1501_vm8 = vcmp.gt.f32.partialorder %v1430_v35, 0.0 }
 0x28b   : > { %v1914_v2 = vmul.f32 -1.442695, %v1432_v17  ;;  %v1562_v18 = vmul.f32 1.442695, %v1528_v43 }
 0x28c   : > { %v2099_v38 = vpop.eup %2098  ;;  %v1544_v53 = vmul.f32 1.442695, %v1519_v22 }
 0x28d   : > { %v1716_v7 = vmul.f32 %v2099_v38, %v1590_v42  ;;  %2102 = vpow2.f32 %v1914_v2  ;;  %v2101_v44 = vpop.eup %2100 }
 0x28e   : > { %v1725_v48 = vmul.f32 %v2101_v44, %v1599_v6  ;;  %2104 = vpow2.f32 %v1923_v1 }
 0x28f   : > { %1734 = vst [vmem:[%s2998_s22 + $0x30] sm:$0xff] %v1716_v7  ;;  %2106 = vpow2.f32 %v1544_v53 }
 0x290   : > { %1743 = vst [vmem:[%s2998_s22 + $0x78] sm:$0xff] %v1725_v48  ;;  %2108 = vpow2.f32 %v1562_v18 }
 0x292   : > { %v1489_v46 = vpop.f32.mrb[16].mxu1 }
 0x293   : > { %v1435_v45 = vpop.f32.mrb[16].mxu0  ;;  %v1491_v47 = vpop.f32.mrb[17].mxu1  ;;  %v1490_v12 = vadd.f32 %v1489_v46, %v2970_v61 }
 0x294   : > { %v1436_v16 = vadd.f32 %v1435_v45, %v2970_v61  ;;  %v1437_v11 = vpop.f32.mrb[17].mxu0  ;;  %v1492_v20 = vadd.f32 %v1491_v47, %v2972_v23 }
 0x295   : > { %v1438_v50 = vadd.f32 %v1437_v11, %v2972_v23  ;;  %v1529_v9 = vmin.f32 %v1490_v12, 0.0  ;;  %vm1511_vm4 = vcmp.gt.f32.partialorder %v1490_v12, 0.0 }
 0x296   : > { %v1520_v55 = vmin.f32 %v1436_v16, 0.0  ;;  %v1924_v49 = vmul.f32 -1.442695, %v1492_v20  ;;  %vm1502_vm3 = vcmp.gt.f32.partialorder %v1436_v16, 0.0 }
 0x297   : > { %v2103_v51 = vpop.eup %2102  ;;  %v1915_v25 = vmul.f32 -1.442695, %v1438_v50  ;;  %v1564_v57 = vmul.f32 1.442695, %v1529_v9 }
 0x298   : > { %v1663_v58 = vadd.f32 1.0, %v2103_v51  ;;  %v2105_v27 = vpop.eup %2104  ;;  %v1546_v3 = vmul.f32 1.442695, %v1520_v55 }
 0x299   : > { %2110 = vpow2.f32 %v1915_v25  ;;  %v1672_v56 = vadd.f32 1.0, %v2105_v27  ;;  %v2107_v60 = vpop.eup %2106 }
 0x29a   : > { %2112 = vrcp.f32 %v1663_v58  ;;  %v2109_v54 = vpop.eup %2108  ;;  %v1896_v23 = vadd.f32 -1.0, %v2107_v60 }
 0x29b   : > { %2114 = vrcp.f32 %v1672_v56  ;;  %v1905_v59 = vadd.f32 -1.0, %v2109_v54 }
 0x29c   : > { %2116 = vpow2.f32 %v1924_v49  ;;  %v1591_v34 = vsel %vm1501_vm8, %v1430_v35, %v1896_v23 }
 0x29d   : > { %2118 = vpow2.f32 %v1546_v3  ;;  %v1600_v19 = vsel %vm1510_vm2, %v1484_v0, %v1905_v59 }
 0x29e   : > { %2120 = vpow2.f32 %v1564_v57 }
 0x2a3   : > { %v2111_v5 = vpop.eup %2110 }
 0x2a4   : > { %v2113_v61 = vpop.eup %2112  ;;  %v1664_v13 = vadd.f32 1.0, %v2111_v5 }
 0x2a5   : > { %v1717_v63 = vmul.f32 %v2113_v61, %v1591_v34  ;;  %v2115_v10 = vpop.eup %2114 }
 0x2a6   : > { %2122 = vrcp.f32 %v1664_v13  ;;  %v2117_v21 = vpop.eup %2116  ;;  %v1726_v15 = vmul.f32 %v2115_v10, %v1600_v19 }
 0x2a7   : > { %1735 = vst [vmem:[%s2998_s22 + $0x38] sm:$0xff] %v1717_v63  ;;  %v2119_v28 = vpop.eup %2118  ;;  %v1673_v26 = vadd.f32 1.0, %v2117_v21 }
 0x2a8   : > { %1744 = vst [vmem:[%s2998_s22 + $0x80] sm:$0xff] %v1726_v15  ;;  %v1897_v31 = vadd.f32 -1.0, %v2119_v28  ;;  %v2121_v32 = vpop.eup %2120 }
 0x2a9   : > { %2124 = vrcp.f32 %v1673_v26  ;;  %v1906_v33 = vadd.f32 -1.0, %v2121_v32 }
 0x2aa   : > { %v1592_v30 = vsel %vm1502_vm3, %v1436_v16, %v1897_v31 }
 0x2ab   : > { %v1601_v36 = vsel %vm1511_vm4, %v1490_v12, %v1906_v33 }
 0x2b0   : > { %v2123_v29 = vpop.eup %2122 }
 0x2b1   : > { %v1718_v8 = vmul.f32 %v2123_v29, %v1592_v30 }
 0x2b3   : > { %1736 = vst [vmem:[%s2998_s22 + $0x40] sm:$0xff] %v1718_v8  ;;  %v2125_v24 = vpop.eup %2124 }
 0x2b4   : > { %v1727_v37 = vmul.f32 %v2125_v24, %v1601_v36 }
 0x2b6   : > { %1745 = vst [vmem:[%s2998_s22 + $0x88] sm:$0xff] %v1727_v37 }
 0x2b7   : > { %2139 = shalt.err (!%p2136_p5)
}
 0x2b8   : > { %s2140_s8 = scalar_lea.hbm %s3054_s30, 2304  ;;  %s2144_s9 = scalar_lea.hbm %s3111_s4, 4608 }
 0x2b9   : > { %p2141_p6 = scmp.ne.s32.totalorder %s3054_s30, %s2140_s8  ;;  %p2145_p10 = scmp.lt.u32.totalorder %s3054_s30, %s3111_s4 }
 0x2ba   : > { %p2146_p11 = scmp.lt.u32.totalorder %s2144_s9, %s2140_s8  ;;  %p2148_p13 = scmp.lt.u32.totalorder %s2140_s8, %s3054_s30 }
 0x2bb   : > { %p2142_p7 = pnand %p2141_p6, %p2283_p4 }
 0x2bc   : > { %p2147_p12 = por %p2146_p11, %p2145_p10 }
 0x2bd   : > { %p2143_p9 = pneg %p2142_p7 }
 0x2be   : > { %p2149_p0 = por %p2148_p13, %p2147_p12 }
 0x2c0   : > { %p2150_p1 = pnand %p2149_p0, %p2143_p9 }
 0x2c2   : > { %2153 = shalt.err (!%p2150_p1)
}
 0x2c3   : > { %s2216_s22 = smov 128   ;;  %s2217_s13 = smov 8  }
 0x2c4   : > { %1952 = dma.vmem_to_hbm [thread:$0]  (%p2283_p4), %s3056_s24, 2304, %s3054_s30, %s3061_s5, %s2216_s22, %s2216_s22, %s2217_s13  }
 0x2c5 PF: > { %p1958_p2 = scmp.ge.s32.totalorder %s2204_s20, 2  ;;  %s1777_s26 = sand.u32 1, %s2184_s15  }
 0x2c6   : > { %s1778_s29 = scalar_lea.sflag [#allocation4], %s1777_s26 }
 0x2c7   : > { %p1955_p3 = pnand %p1958_p2, %p2290_p8 }
 0x2c9   : > { %2179 = dma.done.wait (!%p1955_p3), %s1778_s29, 2304  }
 0x2ca   : > { %2181 = vsyncadd (!%p1955_p3), %s1778_s29, 4294964992  ;;  %s17_s20 = sadd.s32 1, %s2204_s20   ;;  %s3120_s15 = smov %s2188_s16 }
 0x2cb   : > { %p14_p5 = scmp.ge.s32.totalorder %s17_s20, 4   ;;  %s3121_s16 = smov %s2192_s17 }
 0x2cc   : > { %s3122_s17 = smov %s2296_s28  ;;  %s3123_s18 = smov %s2200_s19 }
 0x2cd   : > { %s3124_s19 = smov %s3126_s23  ;;  %16 = sbr.rel (!%p14_p5) target bundleno = 4 (0x4), region = 74 }
 0x2d4   :  { %1783 = vsyncpa [#allocation4], 1 }
 0x2d5   :  { %1785 = vsyncpa [#allocation4 + $0x1], 1 }

</bundles_post_ra>
